<compile_context>
chip_gen: v7x
topology: tpu7x:2x2x1
jax: 0.10.0
libtpu: 0.0.40
codegen_flags: <defaults>
</compile_context>

<pallas_src>
import jax
import jax.numpy as jnp
from jax import lax
from jax.experimental import pallas as pl
from jax.experimental.pallas import tpu as pltpu


def _round_up(x, m):
    return ((x + m - 1) // m) * m


def _chip_config():
    """Generation-aware knobs (conservative defaults when the chip is unknown)."""
    try:
        kind = jax.devices()[0].device_kind.lower()
    except Exception:
        kind = ""
    is_v7 = ("v7" in kind) or ("7x" in kind)
    is_v6 = ("v6" in kind) and not is_v7
    is_v5_or_older = (not is_v6 and not is_v7
                      and any(s in kind for s in ("v5", "v4", "v3", "v2")))
    known = is_v7 or is_v6 or is_v5_or_older
    return dict(
        is_v7=is_v7,
        is_v6=is_v6,
        # one-shot weight load is only safe on known single-TensorCore chips
        single_core=known and not is_v7,
        # bf16 EUP (tanh) exists on v6e / v7x only
        bf16_act=is_v6 or is_v7,
        # v7x has 64 MiB VMEM per TC; v5e/v6e have 128 MiB
        vmem_cap=(100 << 20) if (is_v6 or is_v5_or_older) else (56 << 20),
    )


def _make_rnn_kernel(num_layers, t_blk, nonlinearity, last_activation,
                     bf16_act, one_shot_weights):
    if nonlinearity == "tanh":
        act = jnp.tanh
    else:  # 'relu'
        act = lambda v: jnp.maximum(v, 0.0)

    def kernel(x_ref, wih0_hbm, wihr_hbm, whh_hbm, b_hbm, wfc_hbm, bfc_hbm,
               out_ref,
               h_ref, wih0_v, wihr_v, whh_v, b_v, wfc_v, bfc_v, sems):
        b_idx = pl.program_id(0)
        t = pl.program_id(1)
        last_t = pl.num_programs(1) - 1

        if one_shot_weights:
            # scratch persists across the whole grid on a single-TC chip
            copy_cond = (b_idx == 0) & (t == 0)
            fc_wait_cond = (b_idx == 0) & (t == last_t)
        else:
            copy_cond = t == 0
            fc_wait_cond = t == last_t

        @pl.when(copy_cond)
        def _load_weights():
            # Start every weight DMA up-front (they overlap each other; the fc
            # copies finish under the recurrence). Wait only for what the
            # recurrence needs now; fc waits are deferred to the last chunk.
            rec_cps = [pltpu.make_async_copy(wih0_hbm, wih0_v, sems.at[0]),
                       pltpu.make_async_copy(whh_hbm, whh_v, sems.at[2]),
                       pltpu.make_async_copy(b_hbm, b_v, sems.at[3])]
            if num_layers > 1:
                rec_cps.append(pltpu.make_async_copy(wihr_hbm, wihr_v, sems.at[1]))
            fc_cps = [pltpu.make_async_copy(wfc_hbm, wfc_v, sems.at[4]),
                      pltpu.make_async_copy(bfc_hbm, bfc_v, sems.at[5])]
            for cp in rec_cps + fc_cps:
                cp.start()
            for cp in rec_cps:
                cp.wait()

        @pl.when(t == 0)
        def _init_h():
            h_ref[...] = jnp.zeros_like(h_ref)          # h0 = 0 (per batch chunk)

        def step(tt):
            inp = x_ref[tt]                              # (B_blk, I_pad) bf16, lane-dense
            for layer in range(num_layers):
                w_in = wih0_v[...] if layer == 0 else wihr_v[layer - 1]
                # two accumulating dots (no concat temp)
                pre = jnp.dot(inp, w_in, preferred_element_type=jnp.float32)
                pre = pre + jnp.dot(h_ref[layer], whh_v[layer],
                                    preferred_element_type=jnp.float32)
                pre = pre + b_v[layer]                   # (1, H_pad) f32, sublane bcast
                if bf16_act:
                    h_new = act(pre.astype(jnp.bfloat16))      # bf16 EUP (v6e/v7x)
                else:
                    h_new = act(pre).astype(jnp.bfloat16)      # f32 EUP (v5e & older)
                h_ref[layer] = h_new                     # bf16 hidden state
                inp = h_new                              # feeds next layer

        if t_blk <= 16:
            for tt in range(t_blk):                      # bounded static unroll
                step(tt)
        else:
            def body(tt, carry):
                step(tt)
                return carry
            lax.fori_loop(0, t_blk, body, 0, unroll=8)   # bounded vreg pressure

        @pl.when(fc_wait_cond)
        def _wait_fc():
            pltpu.make_async_copy(wfc_hbm, wfc_v, sems.at[4]).wait()
            pltpu.make_async_copy(bfc_hbm, bfc_v, sems.at[5]).wait()

        @pl.when(t == last_t)
        def _final():
            h_top = h_ref[num_layers - 1]                # (B_blk, H_pad) bf16
            logits = (jnp.dot(h_top, wfc_v[...],
                              preferred_element_type=jnp.float32) + bfc_v[...])
            if last_activation == "softmax":
                m = jnp.max(logits, axis=-1, keepdims=True)
                e = jnp.exp(logits - m)                  # padded classes: exp(-1e30)=0
                logits = e / jnp.sum(e, axis=-1, keepdims=True)
            out_ref[...] = logits

    return kernel


def prepare_params(params, input_size, hidden_size, num_layers, num_classes):
    """Pad to lane-aligned sizes; weights -> bf16, biases stay f32."""
    I_pad = _round_up(input_size, 128)
    H_pad = _round_up(hidden_size, 128)
    C_pad = _round_up(num_classes, 128)
    dI, dH, dC = I_pad - input_size, H_pad - hidden_size, C_pad - num_classes

    w_ih0 = jnp.pad(params["w_ih0"], ((0, dI), (0, dH))).astype(jnp.bfloat16)
    if num_layers > 1:
        w_ih_rest = jnp.pad(params["w_ih_rest"],
                            ((0, 0), (0, dH), (0, dH))).astype(jnp.bfloat16)
    else:
        w_ih_rest = jnp.zeros((1, H_pad, H_pad), jnp.bfloat16)   # unused dummy
    w_hh = jnp.pad(params["w_hh"], ((0, 0), (0, dH), (0, dH))).astype(jnp.bfloat16)
    b = jnp.pad(params["b"], ((0, 0), (0, 0), (0, dH))).astype(jnp.float32)
    w_fc = jnp.pad(params["w_fc"], ((0, dH), (0, dC))).astype(jnp.bfloat16)
    # Padded classes get a huge negative bias -> ~0 probability after softmax.
    b_fc = jnp.pad(params["b_fc"], ((0, 0), (0, dC)),
                   constant_values=-1e30).astype(jnp.float32)
    return dict(w_ih0=w_ih0, w_ih_rest=w_ih_rest, w_hh=w_hh, b=b, w_fc=w_fc,
                b_fc=b_fc, I_pad=I_pad, H_pad=H_pad, C_pad=C_pad)


def torch_rnn_forward(x, params, *, input_size, hidden_size, num_layers,
                      num_classes, nonlinearity="tanh", last_activation="softmax"):
    """x: (B, T, input_size) float32 (batch_first like PyTorch). -> (B, num_classes)."""
    B, T, I = x.shape
    assert I == input_size
    cfg = _chip_config()
    prep = prepare_params(params, input_size, hidden_size, num_layers, num_classes)
    I_pad, H_pad, C_pad = prep["I_pad"], prep["H_pad"], prep["C_pad"]

    # Time blocking: largest divisor of T <= 32 (time cannot be zero-padded for
    # an RNN, so never fall back to T_blk=T for huge T).
    T_blk = max(d for d in range(1, min(T, 32) + 1) if T % d == 0)
    nT = T // T_blk

    # Batch blocking: sublane-aligned; larger chunks on v6e; >=2 chunks on v7x
    # so both TensorCores get work (batch rows are independent -> zero-padding
    # the batch is safe, padded rows are sliced off).
    target_b = 256 if (cfg["is_v6"] and B >= 256) else 128
    if cfg["is_v7"]:
        B_blk = max(8, min(target_b, _round_up(-(-B // 2), 8)))
        B_pad = max(_round_up(B, B_blk), 2 * B_blk)
    else:
        B_blk = min(target_b, _round_up(B, 8))
        B_pad = _round_up(B, B_blk)
    nB = B_pad // B_blk

    # Time-leading, lane-padded bf16 input: (T, B_pad, I_pad); each step is a
    # contiguous lane-dense (B_blk, I_pad) tile (no sublane-strided slices).
    x_t = jnp.transpose(x, (1, 0, 2))
    x_t = jnp.pad(x_t, ((0, 0), (0, B_pad - B), (0, I_pad - I))).astype(jnp.bfloat16)

    n_rest = max(num_layers - 1, 1)
    kernel = _make_rnn_kernel(num_layers, T_blk, nonlinearity, last_activation,
                              cfg["bf16_act"], cfg["single_core"])

    # VMEM budget: single-buffered weights + double-buffered x/out + bf16 h.
    weight_bytes = ((I_pad * H_pad + n_rest * H_pad * H_pad
                     + num_layers * H_pad * H_pad + H_pad * C_pad) * 2
                    + (num_layers * H_pad + C_pad) * 4)
    need = (weight_bytes
            + 2 * T_blk * B_blk * I_pad * 2
            + 2 * B_blk * C_pad * 4
            + num_layers * B_blk * H_pad * 2)
    vmem_limit = int(min(max(32 << 20, 1.5 * need + (4 << 20)), cfg["vmem_cap"]))

    dim_sem = (("arbitrary", "arbitrary") if cfg["single_core"]
               else ("parallel", "arbitrary"))

    grid_spec = pltpu.PrefetchScalarGridSpec(
        num_scalar_prefetch=0,
        grid=(nB, nT),
        in_specs=[
            pl.BlockSpec((T_blk, B_blk, I_pad), lambda b, t: (t, b, 0)),  # x (pipelined)
            pl.BlockSpec(memory_space=pl.ANY),   # W_ih layer 0
            pl.BlockSpec(memory_space=pl.ANY),   # W_ih layers 1..L-1
            pl.BlockSpec(memory_space=pl.ANY),   # W_hh all layers
            pl.BlockSpec(memory_space=pl.ANY),   # pre-summed biases
            pl.BlockSpec(memory_space=pl.ANY),   # fc weight
            pl.BlockSpec(memory_space=pl.ANY),   # fc bias
        ],
        out_specs=pl.BlockSpec((B_blk, C_pad), lambda b, t: (b, 0)),
        scratch_shapes=[
            pltpu.VMEM((num_layers, B_blk, H_pad), jnp.bfloat16),   # hidden state (bf16)
            pltpu.VMEM((I_pad, H_pad), jnp.bfloat16),               # W_ih layer 0
            pltpu.VMEM((n_rest, H_pad, H_pad), jnp.bfloat16),       # W_ih layers 1..L-1
            pltpu.VMEM((num_layers, H_pad, H_pad), jnp.bfloat16),   # W_hh
            pltpu.VMEM((num_layers, 1, H_pad), jnp.float32),        # biases
            pltpu.VMEM((H_pad, C_pad), jnp.bfloat16),               # fc weight
            pltpu.VMEM((1, C_pad), jnp.float32),                    # fc bias
            pltpu.SemaphoreType.DMA((6,)),                          # weight-copy sems
        ],
    )

    out = pl.pallas_call(
        kernel,
        out_shape=jax.ShapeDtypeStruct((B_pad, C_pad), jnp.float32),
        grid_spec=grid_spec,
        compiler_params=pltpu.CompilerParams(
            dimension_semantics=dim_sem,
            vmem_limit_bytes=vmem_limit),
    )(x_t, prep["w_ih0"], prep["w_ih_rest"], prep["w_hh"], prep["b"],
      prep["w_fc"], prep["b_fc"])
    return out[:B, :num_classes]


def init_params(key, input_size, hidden_size, num_layers, num_classes):
    """U(-1/sqrt(H), 1/sqrt(H)) like PyTorch; b_ih and b_hh pre-summed."""
    k = 1.0 / jnp.sqrt(jnp.float32(hidden_size))
    keys = jax.random.split(key, 7)
    n_rest = max(num_layers - 1, 1)
    u = lambda kk, shape: jax.random.uniform(kk, shape, jnp.float32, -k, k)
    return {
        "w_ih0": u(keys[0], (input_size, hidden_size)),
        "w_ih_rest": u(keys[1], (n_rest, hidden_size, hidden_size)),
        "w_hh": u(keys[2], (num_layers, hidden_size, hidden_size)),
        "b": u(keys[3], (num_layers, 1, hidden_size))
             + u(keys[4], (num_layers, 1, hidden_size)),
        "w_fc": u(keys[5], (hidden_size, num_classes)),
        "b_fc": u(keys[6], (1, num_classes)),
    }


def rnn_reference_f32(x, params, num_layers, nonlinearity, last_activation):
    """Pure-JAX f32 reference of the PyTorch forward pass (semantic check)."""
    B, T, _ = x.shape
    H = params["w_hh"].shape[-1]
    act = jnp.tanh if nonlinearity == "tanh" else jax.nn.relu
    h = [jnp.zeros((B, H), jnp.float32) for _ in range(num_layers)]
    inp = None
    for t in range(T):
        inp = x[:, t, :]
        for layer in range(num_layers):
            w_in = params["w_ih0"] if layer == 0 else params["w_ih_rest"][layer - 1]
            hl = act(inp @ w_in + h[layer] @ params["w_hh"][layer] + params["b"][layer])
            h[layer] = hl
            inp = hl
    out = inp @ params["w_fc"] + params["b_fc"]
    if last_activation == "softmax":
        out = jax.nn.softmax(out, axis=-1)
    return out


def rnn_reference_bf16(x, prep, num_layers, nonlinearity, last_activation,
                       num_classes, bf16_act):
    """Mirrors the kernel's padded / bf16 / f32-accumulate compute path."""
    B, T, I = x.shape
    I_pad, H_pad = prep["I_pad"], prep["H_pad"]
    act = jnp.tanh if nonlinearity == "tanh" else (lambda v: jnp.maximum(v, 0.0))
    xp = jnp.pad(x, ((0, 0), (0, 0), (0, I_pad - I))).astype(jnp.bfloat16)
    h = [jnp.zeros((B, H_pad), jnp.bfloat16) for _ in range(num_layers)]
    inp = None
    for t in range(T):
        inp = xp[:, t, :]
        for layer in range(num_layers):
            w_in = prep["w_ih0"] if layer == 0 else prep["w_ih_rest"][layer - 1]
            pre = (jnp.dot(inp, w_in, preferred_element_type=jnp.float32)
                   + jnp.dot(h[layer], prep["w_hh"][layer],
                             preferred_element_type=jnp.float32)
                   + prep["b"][layer])
            hl = act(pre.astype(jnp.bfloat16)) if bf16_act else act(pre).astype(jnp.bfloat16)
            h[layer] = hl
            inp = hl
    logits = (jnp.dot(h[num_layers - 1], prep["w_fc"],
                      preferred_element_type=jnp.float32) + prep["b_fc"])
    if last_activation == "softmax":
        m = jnp.max(logits, axis=-1, keepdims=True)
        e = jnp.exp(logits - m)
        logits = e / jnp.sum(e, axis=-1, keepdims=True)
    return logits[:, :num_classes]


if __name__ == "__main__":
    # Small shapes consistent with the module's forward: x is (B, T, input_size)
    B, T = 2, 8
    input_size, hidden_size, num_layers, num_classes = 16, 32, 2, 5
    nonlinearity = "tanh"
    last_activation = "softmax"   # stands in for last_layer_activation=nn.Softmax(dim=1)

    key = jax.random.PRNGKey(0)
    k_x, k_p = jax.random.split(key)
    x = jax.random.normal(k_x, (B, T, input_size), jnp.float32)
    params = init_params(k_p, input_size, hidden_size, num_layers, num_classes)

    out = torch_rnn_forward(x, params, input_size=input_size,
                            hidden_size=hidden_size, num_layers=num_layers,
                            num_classes=num_classes, nonlinearity=nonlinearity,
                            last_activation=last_activation)
    out = jax.block_until_ready(out)
    assert out.shape == (B, num_classes)

    cfg = _chip_config()
    prep = prepare_params(params, input_size, hidden_size, num_layers, num_classes)
    ref_bf16 = rnn_reference_bf16(x, prep, num_layers, nonlinearity,
                                  last_activation, num_classes, cfg["bf16_act"])
    ref_f32 = rnn_reference_f32(x, params, num_layers, nonlinearity, last_activation)

    # Tight check against the bf16-consistent reference; loose semantic check
    # against the full-f32 PyTorch-style reference.
    assert jnp.allclose(out, ref_bf16, atol=2.5e-2, rtol=2.5e-2), (out, ref_bf16)
    assert jnp.allclose(out, ref_f32, atol=7.5e-2), (out, ref_f32)
    print("KERNEL_OK")
</pallas_src>

<mosaic_0001>
module attributes {stable_mosaic.version = 11 : i64} {
  func.func @kernel(%arg0: i32, %arg1: i32, %arg2: memref<8x8x128xbf16, #tpu.memory_space<vmem>>, %arg3: memref<128x128xbf16, #tpu.memory_space<any>>, %arg4: memref<1x128x128xbf16, #tpu.memory_space<any>>, %arg5: memref<2x128x128xbf16, #tpu.memory_space<any>>, %arg6: memref<2x1x128xf32, #tpu.memory_space<any>>, %arg7: memref<128x128xbf16, #tpu.memory_space<any>>, %arg8: memref<1x128xf32, #tpu.memory_space<any>>, %arg9: memref<8x128xf32, #tpu.memory_space<vmem>>, %arg10: memref<2x8x128xbf16, #tpu.memory_space<vmem>>, %arg11: memref<128x128xbf16, #tpu.memory_space<vmem>>, %arg12: memref<1x128x128xbf16, #tpu.memory_space<vmem>>, %arg13: memref<2x128x128xbf16, #tpu.memory_space<vmem>>, %arg14: memref<2x1x128xf32, #tpu.memory_space<vmem>>, %arg15: memref<128x128xbf16, #tpu.memory_space<vmem>>, %arg16: memref<1x128xf32, #tpu.memory_space<vmem>>, %arg17: memref<6x!tpu.dma_semaphore, #tpu.memory_space<semaphore_mem>>) attributes {dimension_semantics = [#tpu.dimension_semantics<parallel>, #tpu.dimension_semantics<arbitrary>], iteration_bounds = array<i64: 1, 1>, scalar_prefetch = 0 : i64, scratch_operands = 8 : i64, tpu.core_type = #tpu.core_type<tc>, window_params = [{transform_indices = @transform_0, window_bounds = array<i64: 8, 8, 128>}, {}, {}, {}, {}, {}, {}, {transform_indices = @transform_7, window_bounds = array<i64: 8, 128>}]} {
    %c0_i32 = arith.constant 0 : i32
    %0 = arith.cmpi eq, %arg1, %c0_i32 : i32
    %c0_i32_0 = arith.constant 0 : i32
    %1 = arith.cmpi eq, %arg1, %c0_i32_0 : i32
    %2 = arith.extui %0 : i1 to i32
    %c0_i32_1 = arith.constant 0 : i32
    %3 = arith.cmpi ne, %2, %c0_i32_1 : i32
    scf.if %3 {
      %c0_i32_286 = arith.constant 0 : i32
      %308 = tpu.memref_slice %arg17[%c0_i32_286] : memref<6x!tpu.dma_semaphore, #tpu.memory_space<semaphore_mem>> -> memref<1x!tpu.dma_semaphore, #tpu.memory_space<semaphore_mem>>
      %309 = tpu.memref_squeeze %308 : memref<1x!tpu.dma_semaphore, #tpu.memory_space<semaphore_mem>> -> memref<!tpu.dma_semaphore, #tpu.memory_space<semaphore_mem>>
      tpu.enqueue_dma source(%arg3 : memref<128x128xbf16, #tpu.memory_space<any>>) target(%arg11 : memref<128x128xbf16, #tpu.memory_space<vmem>>) target_semaphore(%309 : memref<!tpu.dma_semaphore, #tpu.memory_space<semaphore_mem>>)
      %c2_i32 = arith.constant 2 : i32
      %310 = tpu.memref_slice %arg17[%c2_i32] : memref<6x!tpu.dma_semaphore, #tpu.memory_space<semaphore_mem>> -> memref<1x!tpu.dma_semaphore, #tpu.memory_space<semaphore_mem>>
      %311 = tpu.memref_squeeze %310 : memref<1x!tpu.dma_semaphore, #tpu.memory_space<semaphore_mem>> -> memref<!tpu.dma_semaphore, #tpu.memory_space<semaphore_mem>>
      tpu.enqueue_dma source(%arg5 : memref<2x128x128xbf16, #tpu.memory_space<any>>) target(%arg13 : memref<2x128x128xbf16, #tpu.memory_space<vmem>>) target_semaphore(%311 : memref<!tpu.dma_semaphore, #tpu.memory_space<semaphore_mem>>)
      %c3_i32 = arith.constant 3 : i32
      %312 = tpu.memref_slice %arg17[%c3_i32] : memref<6x!tpu.dma_semaphore, #tpu.memory_space<semaphore_mem>> -> memref<1x!tpu.dma_semaphore, #tpu.memory_space<semaphore_mem>>
      %313 = tpu.memref_squeeze %312 : memref<1x!tpu.dma_semaphore, #tpu.memory_space<semaphore_mem>> -> memref<!tpu.dma_semaphore, #tpu.memory_space<semaphore_mem>>
      tpu.enqueue_dma source(%arg6 : memref<2x1x128xf32, #tpu.memory_space<any>>) target(%arg14 : memref<2x1x128xf32, #tpu.memory_space<vmem>>) target_semaphore(%313 : memref<!tpu.dma_semaphore, #tpu.memory_space<semaphore_mem>>)
      %c1_i32 = arith.constant 1 : i32
      %314 = tpu.memref_slice %arg17[%c1_i32] : memref<6x!tpu.dma_semaphore, #tpu.memory_space<semaphore_mem>> -> memref<1x!tpu.dma_semaphore, #tpu.memory_space<semaphore_mem>>
      %315 = tpu.memref_squeeze %314 : memref<1x!tpu.dma_semaphore, #tpu.memory_space<semaphore_mem>> -> memref<!tpu.dma_semaphore, #tpu.memory_space<semaphore_mem>>
      tpu.enqueue_dma source(%arg4 : memref<1x128x128xbf16, #tpu.memory_space<any>>) target(%arg12 : memref<1x128x128xbf16, #tpu.memory_space<vmem>>) target_semaphore(%315 : memref<!tpu.dma_semaphore, #tpu.memory_space<semaphore_mem>>)
      %c4_i32 = arith.constant 4 : i32
      %316 = tpu.memref_slice %arg17[%c4_i32] : memref<6x!tpu.dma_semaphore, #tpu.memory_space<semaphore_mem>> -> memref<1x!tpu.dma_semaphore, #tpu.memory_space<semaphore_mem>>
      %317 = tpu.memref_squeeze %316 : memref<1x!tpu.dma_semaphore, #tpu.memory_space<semaphore_mem>> -> memref<!tpu.dma_semaphore, #tpu.memory_space<semaphore_mem>>
      tpu.enqueue_dma source(%arg7 : memref<128x128xbf16, #tpu.memory_space<any>>) target(%arg15 : memref<128x128xbf16, #tpu.memory_space<vmem>>) target_semaphore(%317 : memref<!tpu.dma_semaphore, #tpu.memory_space<semaphore_mem>>)
      %c5_i32 = arith.constant 5 : i32
      %318 = tpu.memref_slice %arg17[%c5_i32] : memref<6x!tpu.dma_semaphore, #tpu.memory_space<semaphore_mem>> -> memref<1x!tpu.dma_semaphore, #tpu.memory_space<semaphore_mem>>
      %319 = tpu.memref_squeeze %318 : memref<1x!tpu.dma_semaphore, #tpu.memory_space<semaphore_mem>> -> memref<!tpu.dma_semaphore, #tpu.memory_space<semaphore_mem>>
      tpu.enqueue_dma source(%arg8 : memref<1x128xf32, #tpu.memory_space<any>>) target(%arg16 : memref<1x128xf32, #tpu.memory_space<vmem>>) target_semaphore(%319 : memref<!tpu.dma_semaphore, #tpu.memory_space<semaphore_mem>>)
      %c0_i32_287 = arith.constant 0 : i32
      %320 = tpu.memref_slice %arg17[%c0_i32_287] : memref<6x!tpu.dma_semaphore, #tpu.memory_space<semaphore_mem>> -> memref<1x!tpu.dma_semaphore, #tpu.memory_space<semaphore_mem>>
      %321 = tpu.memref_squeeze %320 : memref<1x!tpu.dma_semaphore, #tpu.memory_space<semaphore_mem>> -> memref<!tpu.dma_semaphore, #tpu.memory_space<semaphore_mem>>
      tpu.wait_dma2 semaphore(%321 : memref<!tpu.dma_semaphore, #tpu.memory_space<semaphore_mem>>) src(%arg3 : memref<128x128xbf16, #tpu.memory_space<any>>) dst(%arg11 : memref<128x128xbf16, #tpu.memory_space<vmem>>)
      %c2_i32_288 = arith.constant 2 : i32
      %322 = tpu.memref_slice %arg17[%c2_i32_288] : memref<6x!tpu.dma_semaphore, #tpu.memory_space<semaphore_mem>> -> memref<1x!tpu.dma_semaphore, #tpu.memory_space<semaphore_mem>>
      %323 = tpu.memref_squeeze %322 : memref<1x!tpu.dma_semaphore, #tpu.memory_space<semaphore_mem>> -> memref<!tpu.dma_semaphore, #tpu.memory_space<semaphore_mem>>
      tpu.wait_dma2 semaphore(%323 : memref<!tpu.dma_semaphore, #tpu.memory_space<semaphore_mem>>) src(%arg5 : memref<2x128x128xbf16, #tpu.memory_space<any>>) dst(%arg13 : memref<2x128x128xbf16, #tpu.memory_space<vmem>>)
      %c3_i32_289 = arith.constant 3 : i32
      %324 = tpu.memref_slice %arg17[%c3_i32_289] : memref<6x!tpu.dma_semaphore, #tpu.memory_space<semaphore_mem>> -> memref<1x!tpu.dma_semaphore, #tpu.memory_space<semaphore_mem>>
      %325 = tpu.memref_squeeze %324 : memref<1x!tpu.dma_semaphore, #tpu.memory_space<semaphore_mem>> -> memref<!tpu.dma_semaphore, #tpu.memory_space<semaphore_mem>>
      tpu.wait_dma2 semaphore(%325 : memref<!tpu.dma_semaphore, #tpu.memory_space<semaphore_mem>>) src(%arg6 : memref<2x1x128xf32, #tpu.memory_space<any>>) dst(%arg14 : memref<2x1x128xf32, #tpu.memory_space<vmem>>)
      %c1_i32_290 = arith.constant 1 : i32
      %326 = tpu.memref_slice %arg17[%c1_i32_290] : memref<6x!tpu.dma_semaphore, #tpu.memory_space<semaphore_mem>> -> memref<1x!tpu.dma_semaphore, #tpu.memory_space<semaphore_mem>>
      %327 = tpu.memref_squeeze %326 : memref<1x!tpu.dma_semaphore, #tpu.memory_space<semaphore_mem>> -> memref<!tpu.dma_semaphore, #tpu.memory_space<semaphore_mem>>
      tpu.wait_dma2 semaphore(%327 : memref<!tpu.dma_semaphore, #tpu.memory_space<semaphore_mem>>) src(%arg4 : memref<1x128x128xbf16, #tpu.memory_space<any>>) dst(%arg12 : memref<1x128x128xbf16, #tpu.memory_space<vmem>>)
    } else {
    }
    %c0_i32_2 = arith.constant 0 : i32
    %4 = arith.cmpi eq, %arg1, %c0_i32_2 : i32
    %5 = arith.extui %4 : i1 to i32
    %c0_i32_3 = arith.constant 0 : i32
    %6 = arith.cmpi ne, %5, %c0_i32_3 : i32
    scf.if %6 {
      %cst_286 = arith.constant 0.000000e+00 : bf16
      %308 = vector.broadcast %cst_286 : bf16 to vector<2x8x128xbf16>
      %c0_287 = arith.constant 0 : index
      %c0_288 = arith.constant 0 : index
      %c0_289 = arith.constant 0 : index
      %309 = vector.load %arg10[%c0_287, %c0_288, %c0_289] : memref<2x8x128xbf16, #tpu.memory_space<vmem>>, vector<2x8x128xbf16>
      tpu.vector_store %arg10[%c0_287, %c0_288, %c0_289], %308 {strides = array<i32>} : memref<2x8x128xbf16, #tpu.memory_space<vmem>>, vector<2x8x128xbf16>,
    } else {
    }
    %c0 = arith.constant 0 : index
    %c0_4 = arith.constant 0 : index
    %c0_5 = arith.constant 0 : index
    %7 = vector.load %arg2[%c0, %c0_4, %c0_5] : memref<8x8x128xbf16, #tpu.memory_space<vmem>>, vector<1x8x128xbf16>
    %8 = vector.shape_cast %7 : vector<1x8x128xbf16> to vector<8x128xbf16>
    %c0_6 = arith.constant 0 : index
    %c0_7 = arith.constant 0 : index
    %9 = vector.load %arg11[%c0_6, %c0_7] : memref<128x128xbf16, #tpu.memory_space<vmem>>, vector<128x128xbf16>
    %cst = arith.constant dense<0.000000e+00> : vector<8x128xf32>
    %10 = tpu.matmul %8, %9, %cst {dimension_numbers = #tpu.dot_dimension_numbers<[1], [0], [0], [1], [0, 0, 1, 1], [], []>} : vector<8x128xbf16>, vector<128x128xbf16>, vector<8x128xf32> -> vector<8x128xf32>
    %c0_8 = arith.constant 0 : index
    %c0_9 = arith.constant 0 : index
    %c0_10 = arith.constant 0 : index
    %11 = vector.load %arg10[%c0_8, %c0_9, %c0_10] : memref<2x8x128xbf16, #tpu.memory_space<vmem>>, vector<1x8x128xbf16>
    %12 = vector.shape_cast %11 : vector<1x8x128xbf16> to vector<8x128xbf16>
    %c0_11 = arith.constant 0 : index
    %c0_12 = arith.constant 0 : index
    %c0_13 = arith.constant 0 : index
    %13 = vector.load %arg13[%c0_11, %c0_12, %c0_13] : memref<2x128x128xbf16, #tpu.memory_space<vmem>>, vector<1x128x128xbf16>
    %14 = vector.shape_cast %13 : vector<1x128x128xbf16> to vector<128x128xbf16>
    %cst_14 = arith.constant dense<0.000000e+00> : vector<8x128xf32>
    %15 = tpu.matmul %12, %14, %cst_14 {dimension_numbers = #tpu.dot_dimension_numbers<[1], [0], [0], [1], [0, 0, 1, 1], [], []>} : vector<8x128xbf16>, vector<128x128xbf16>, vector<8x128xf32> -> vector<8x128xf32>
    %16 = arith.addf %10, %15 : vector<8x128xf32>
    %c0_15 = arith.constant 0 : index
    %c0_16 = arith.constant 0 : index
    %c0_17 = arith.constant 0 : index
    %17 = vector.load %arg14[%c0_15, %c0_16, %c0_17] : memref<2x1x128xf32, #tpu.memory_space<vmem>>, vector<1x1x128xf32>
    %18 = vector.shape_cast %17 : vector<1x1x128xf32> to vector<1x128xf32>
    %19 = vector.broadcast %18 : vector<1x128xf32> to vector<8x128xf32>
    %20 = arith.addf %16, %19 : vector<8x128xf32>
    %21 = math.tanh %20 : vector<8x128xf32>
    %22 = arith.truncf %21 : vector<8x128xf32> to vector<8x128xbf16>
    %c0_18 = arith.constant 0 : index
    %c0_19 = arith.constant 0 : index
    %c0_20 = arith.constant 0 : index
    %23 = vector.load %arg10[%c0_18, %c0_19, %c0_20] : memref<2x8x128xbf16, #tpu.memory_space<vmem>>, vector<1x8x128xbf16>
    %24 = vector.shape_cast %23 : vector<1x8x128xbf16> to vector<8x128xbf16>
    %25 = vector.shape_cast %22 : vector<8x128xbf16> to vector<1x8x128xbf16>
    tpu.vector_store %arg10[%c0_18, %c0_19, %c0_20], %25 {strides = array<i32>} : memref<2x8x128xbf16, #tpu.memory_space<vmem>>, vector<1x8x128xbf16>,
    %c0_21 = arith.constant 0 : index
    %c0_22 = arith.constant 0 : index
    %c0_23 = arith.constant 0 : index
    %26 = vector.load %arg12[%c0_21, %c0_22, %c0_23] : memref<1x128x128xbf16, #tpu.memory_space<vmem>>, vector<1x128x128xbf16>
    %27 = vector.shape_cast %26 : vector<1x128x128xbf16> to vector<128x128xbf16>
    %cst_24 = arith.constant dense<0.000000e+00> : vector<8x128xf32>
    %28 = tpu.matmul %22, %27, %cst_24 {dimension_numbers = #tpu.dot_dimension_numbers<[1], [0], [0], [1], [0, 0, 1, 1], [], []>} : vector<8x128xbf16>, vector<128x128xbf16>, vector<8x128xf32> -> vector<8x128xf32>
    %c1 = arith.constant 1 : index
    %c0_25 = arith.constant 0 : index
    %c0_26 = arith.constant 0 : index
    %29 = vector.load %arg10[%c1, %c0_25, %c0_26] : memref<2x8x128xbf16, #tpu.memory_space<vmem>>, vector<1x8x128xbf16>
    %30 = vector.shape_cast %29 : vector<1x8x128xbf16> to vector<8x128xbf16>
    %c1_27 = arith.constant 1 : index
    %c0_28 = arith.constant 0 : index
    %c0_29 = arith.constant 0 : index
    %31 = vector.load %arg13[%c1_27, %c0_28, %c0_29] : memref<2x128x128xbf16, #tpu.memory_space<vmem>>, vector<1x128x128xbf16>
    %32 = vector.shape_cast %31 : vector<1x128x128xbf16> to vector<128x128xbf16>
    %cst_30 = arith.constant dense<0.000000e+00> : vector<8x128xf32>
    %33 = tpu.matmul %30, %32, %cst_30 {dimension_numbers = #tpu.dot_dimension_numbers<[1], [0], [0], [1], [0, 0, 1, 1], [], []>} : vector<8x128xbf16>, vector<128x128xbf16>, vector<8x128xf32> -> vector<8x128xf32>
    %34 = arith.addf %28, %33 : vector<8x128xf32>
    %c1_31 = arith.constant 1 : index
    %c0_32 = arith.constant 0 : index
    %c0_33 = arith.constant 0 : index
    %35 = vector.load %arg14[%c1_31, %c0_32, %c0_33] : memref<2x1x128xf32, #tpu.memory_space<vmem>>, vector<1x1x128xf32>
    %36 = vector.shape_cast %35 : vector<1x1x128xf32> to vector<1x128xf32>
    %37 = vector.broadcast %36 : vector<1x128xf32> to vector<8x128xf32>
    %38 = arith.addf %34, %37 : vector<8x128xf32>
    %39 = math.tanh %38 : vector<8x128xf32>
    %40 = arith.truncf %39 : vector<8x128xf32> to vector<8x128xbf16>
    %c1_34 = arith.constant 1 : index
    %c0_35 = arith.constant 0 : index
    %c0_36 = arith.constant 0 : index
    %41 = vector.load %arg10[%c1_34, %c0_35, %c0_36] : memref<2x8x128xbf16, #tpu.memory_space<vmem>>, vector<1x8x128xbf16>
    %42 = vector.shape_cast %41 : vector<1x8x128xbf16> to vector<8x128xbf16>
    %43 = vector.shape_cast %40 : vector<8x128xbf16> to vector<1x8x128xbf16>
    tpu.vector_store %arg10[%c1_34, %c0_35, %c0_36], %43 {strides = array<i32>} : memref<2x8x128xbf16, #tpu.memory_space<vmem>>, vector<1x8x128xbf16>,
    %c1_37 = arith.constant 1 : index
    %c0_38 = arith.constant 0 : index
    %c0_39 = arith.constant 0 : index
    %44 = vector.load %arg2[%c1_37, %c0_38, %c0_39] : memref<8x8x128xbf16, #tpu.memory_space<vmem>>, vector<1x8x128xbf16>
    %45 = vector.shape_cast %44 : vector<1x8x128xbf16> to vector<8x128xbf16>
    %c0_40 = arith.constant 0 : index
    %c0_41 = arith.constant 0 : index
    %46 = vector.load %arg11[%c0_40, %c0_41] : memref<128x128xbf16, #tpu.memory_space<vmem>>, vector<128x128xbf16>
    %cst_42 = arith.constant dense<0.000000e+00> : vector<8x128xf32>
    %47 = tpu.matmul %45, %46, %cst_42 {dimension_numbers = #tpu.dot_dimension_numbers<[1], [0], [0], [1], [0, 0, 1, 1], [], []>} : vector<8x128xbf16>, vector<128x128xbf16>, vector<8x128xf32> -> vector<8x128xf32>
    %c0_43 = arith.constant 0 : index
    %c0_44 = arith.constant 0 : index
    %c0_45 = arith.constant 0 : index
    %48 = vector.load %arg10[%c0_43, %c0_44, %c0_45] : memref<2x8x128xbf16, #tpu.memory_space<vmem>>, vector<1x8x128xbf16>
    %49 = vector.shape_cast %48 : vector<1x8x128xbf16> to vector<8x128xbf16>
    %c0_46 = arith.constant 0 : index
    %c0_47 = arith.constant 0 : index
    %c0_48 = arith.constant 0 : index
    %50 = vector.load %arg13[%c0_46, %c0_47, %c0_48] : memref<2x128x128xbf16, #tpu.memory_space<vmem>>, vector<1x128x128xbf16>
    %51 = vector.shape_cast %50 : vector<1x128x128xbf16> to vector<128x128xbf16>
    %cst_49 = arith.constant dense<0.000000e+00> : vector<8x128xf32>
    %52 = tpu.matmul %49, %51, %cst_49 {dimension_numbers = #tpu.dot_dimension_numbers<[1], [0], [0], [1], [0, 0, 1, 1], [], []>} : vector<8x128xbf16>, vector<128x128xbf16>, vector<8x128xf32> -> vector<8x128xf32>
    %53 = arith.addf %47, %52 : vector<8x128xf32>
    %c0_50 = arith.constant 0 : index
    %c0_51 = arith.constant 0 : index
    %c0_52 = arith.constant 0 : index
    %54 = vector.load %arg14[%c0_50, %c0_51, %c0_52] : memref<2x1x128xf32, #tpu.memory_space<vmem>>, vector<1x1x128xf32>
    %55 = vector.shape_cast %54 : vector<1x1x128xf32> to vector<1x128xf32>
    %56 = vector.broadcast %55 : vector<1x128xf32> to vector<8x128xf32>
    %57 = arith.addf %53, %56 : vector<8x128xf32>
    %58 = math.tanh %57 : vector<8x128xf32>
    %59 = arith.truncf %58 : vector<8x128xf32> to vector<8x128xbf16>
    %c0_53 = arith.constant 0 : index
    %c0_54 = arith.constant 0 : index
    %c0_55 = arith.constant 0 : index
    %60 = vector.load %arg10[%c0_53, %c0_54, %c0_55] : memref<2x8x128xbf16, #tpu.memory_space<vmem>>, vector<1x8x128xbf16>
    %61 = vector.shape_cast %60 : vector<1x8x128xbf16> to vector<8x128xbf16>
    %62 = vector.shape_cast %59 : vector<8x128xbf16> to vector<1x8x128xbf16>
    tpu.vector_store %arg10[%c0_53, %c0_54, %c0_55], %62 {strides = array<i32>} : memref<2x8x128xbf16, #tpu.memory_space<vmem>>, vector<1x8x128xbf16>,
    %c0_56 = arith.constant 0 : index
    %c0_57 = arith.constant 0 : index
    %c0_58 = arith.constant 0 : index
    %63 = vector.load %arg12[%c0_56, %c0_57, %c0_58] : memref<1x128x128xbf16, #tpu.memory_space<vmem>>, vector<1x128x128xbf16>
    %64 = vector.shape_cast %63 : vector<1x128x128xbf16> to vector<128x128xbf16>
    %cst_59 = arith.constant dense<0.000000e+00> : vector<8x128xf32>
    %65 = tpu.matmul %59, %64, %cst_59 {dimension_numbers = #tpu.dot_dimension_numbers<[1], [0], [0], [1], [0, 0, 1, 1], [], []>} : vector<8x128xbf16>, vector<128x128xbf16>, vector<8x128xf32> -> vector<8x128xf32>
    %c1_60 = arith.constant 1 : index
    %c0_61 = arith.constant 0 : index
    %c0_62 = arith.constant 0 : index
    %66 = vector.load %arg10[%c1_60, %c0_61, %c0_62] : memref<2x8x128xbf16, #tpu.memory_space<vmem>>, vector<1x8x128xbf16>
    %67 = vector.shape_cast %66 : vector<1x8x128xbf16> to vector<8x128xbf16>
    %c1_63 = arith.constant 1 : index
    %c0_64 = arith.constant 0 : index
    %c0_65 = arith.constant 0 : index
    %68 = vector.load %arg13[%c1_63, %c0_64, %c0_65] : memref<2x128x128xbf16, #tpu.memory_space<vmem>>, vector<1x128x128xbf16>
    %69 = vector.shape_cast %68 : vector<1x128x128xbf16> to vector<128x128xbf16>
    %cst_66 = arith.constant dense<0.000000e+00> : vector<8x128xf32>
    %70 = tpu.matmul %67, %69, %cst_66 {dimension_numbers = #tpu.dot_dimension_numbers<[1], [0], [0], [1], [0, 0, 1, 1], [], []>} : vector<8x128xbf16>, vector<128x128xbf16>, vector<8x128xf32> -> vector<8x128xf32>
    %71 = arith.addf %65, %70 : vector<8x128xf32>
    %c1_67 = arith.constant 1 : index
    %c0_68 = arith.constant 0 : index
    %c0_69 = arith.constant 0 : index
    %72 = vector.load %arg14[%c1_67, %c0_68, %c0_69] : memref<2x1x128xf32, #tpu.memory_space<vmem>>, vector<1x1x128xf32>
    %73 = vector.shape_cast %72 : vector<1x1x128xf32> to vector<1x128xf32>
    %74 = vector.broadcast %73 : vector<1x128xf32> to vector<8x128xf32>
    %75 = arith.addf %71, %74 : vector<8x128xf32>
    %76 = math.tanh %75 : vector<8x128xf32>
    %77 = arith.truncf %76 : vector<8x128xf32> to vector<8x128xbf16>
    %c1_70 = arith.constant 1 : index
    %c0_71 = arith.constant 0 : index
    %c0_72 = arith.constant 0 : index
    %78 = vector.load %arg10[%c1_70, %c0_71, %c0_72] : memref<2x8x128xbf16, #tpu.memory_space<vmem>>, vector<1x8x128xbf16>
    %79 = vector.shape_cast %78 : vector<1x8x128xbf16> to vector<8x128xbf16>
    %80 = vector.shape_cast %77 : vector<8x128xbf16> to vector<1x8x128xbf16>
    tpu.vector_store %arg10[%c1_70, %c0_71, %c0_72], %80 {strides = array<i32>} : memref<2x8x128xbf16, #tpu.memory_space<vmem>>, vector<1x8x128xbf16>,
    %c2 = arith.constant 2 : index
    %c0_73 = arith.constant 0 : index
    %c0_74 = arith.constant 0 : index
    %81 = vector.load %arg2[%c2, %c0_73, %c0_74] : memref<8x8x128xbf16, #tpu.memory_space<vmem>>, vector<1x8x128xbf16>
    %82 = vector.shape_cast %81 : vector<1x8x128xbf16> to vector<8x128xbf16>
    %c0_75 = arith.constant 0 : index
    %c0_76 = arith.constant 0 : index
    %83 = vector.load %arg11[%c0_75, %c0_76] : memref<128x128xbf16, #tpu.memory_space<vmem>>, vector<128x128xbf16>
    %cst_77 = arith.constant dense<0.000000e+00> : vector<8x128xf32>
    %84 = tpu.matmul %82, %83, %cst_77 {dimension_numbers = #tpu.dot_dimension_numbers<[1], [0], [0], [1], [0, 0, 1, 1], [], []>} : vector<8x128xbf16>, vector<128x128xbf16>, vector<8x128xf32> -> vector<8x128xf32>
    %c0_78 = arith.constant 0 : index
    %c0_79 = arith.constant 0 : index
    %c0_80 = arith.constant 0 : index
    %85 = vector.load %arg10[%c0_78, %c0_79, %c0_80] : memref<2x8x128xbf16, #tpu.memory_space<vmem>>, vector<1x8x128xbf16>
    %86 = vector.shape_cast %85 : vector<1x8x128xbf16> to vector<8x128xbf16>
    %c0_81 = arith.constant 0 : index
    %c0_82 = arith.constant 0 : index
    %c0_83 = arith.constant 0 : index
    %87 = vector.load %arg13[%c0_81, %c0_82, %c0_83] : memref<2x128x128xbf16, #tpu.memory_space<vmem>>, vector<1x128x128xbf16>
    %88 = vector.shape_cast %87 : vector<1x128x128xbf16> to vector<128x128xbf16>
    %cst_84 = arith.constant dense<0.000000e+00> : vector<8x128xf32>
    %89 = tpu.matmul %86, %88, %cst_84 {dimension_numbers = #tpu.dot_dimension_numbers<[1], [0], [0], [1], [0, 0, 1, 1], [], []>} : vector<8x128xbf16>, vector<128x128xbf16>, vector<8x128xf32> -> vector<8x128xf32>
    %90 = arith.addf %84, %89 : vector<8x128xf32>
    %c0_85 = arith.constant 0 : index
    %c0_86 = arith.constant 0 : index
    %c0_87 = arith.constant 0 : index
    %91 = vector.load %arg14[%c0_85, %c0_86, %c0_87] : memref<2x1x128xf32, #tpu.memory_space<vmem>>, vector<1x1x128xf32>
    %92 = vector.shape_cast %91 : vector<1x1x128xf32> to vector<1x128xf32>
    %93 = vector.broadcast %92 : vector<1x128xf32> to vector<8x128xf32>
    %94 = arith.addf %90, %93 : vector<8x128xf32>
    %95 = math.tanh %94 : vector<8x128xf32>
    %96 = arith.truncf %95 : vector<8x128xf32> to vector<8x128xbf16>
    %c0_88 = arith.constant 0 : index
    %c0_89 = arith.constant 0 : index
    %c0_90 = arith.constant 0 : index
    %97 = vector.load %arg10[%c0_88, %c0_89, %c0_90] : memref<2x8x128xbf16, #tpu.memory_space<vmem>>, vector<1x8x128xbf16>
    %98 = vector.shape_cast %97 : vector<1x8x128xbf16> to vector<8x128xbf16>
    %99 = vector.shape_cast %96 : vector<8x128xbf16> to vector<1x8x128xbf16>
    tpu.vector_store %arg10[%c0_88, %c0_89, %c0_90], %99 {strides = array<i32>} : memref<2x8x128xbf16, #tpu.memory_space<vmem>>, vector<1x8x128xbf16>,
    %c0_91 = arith.constant 0 : index
    %c0_92 = arith.constant 0 : index
    %c0_93 = arith.constant 0 : index
    %100 = vector.load %arg12[%c0_91, %c0_92, %c0_93] : memref<1x128x128xbf16, #tpu.memory_space<vmem>>, vector<1x128x128xbf16>
    %101 = vector.shape_cast %100 : vector<1x128x128xbf16> to vector<128x128xbf16>
    %cst_94 = arith.constant dense<0.000000e+00> : vector<8x128xf32>
    %102 = tpu.matmul %96, %101, %cst_94 {dimension_numbers = #tpu.dot_dimension_numbers<[1], [0], [0], [1], [0, 0, 1, 1], [], []>} : vector<8x128xbf16>, vector<128x128xbf16>, vector<8x128xf32> -> vector<8x128xf32>
    %c1_95 = arith.constant 1 : index
    %c0_96 = arith.constant 0 : index
    %c0_97 = arith.constant 0 : index
    %103 = vector.load %arg10[%c1_95, %c0_96, %c0_97] : memref<2x8x128xbf16, #tpu.memory_space<vmem>>, vector<1x8x128xbf16>
    %104 = vector.shape_cast %103 : vector<1x8x128xbf16> to vector<8x128xbf16>
    %c1_98 = arith.constant 1 : index
    %c0_99 = arith.constant 0 : index
    %c0_100 = arith.constant 0 : index
    %105 = vector.load %arg13[%c1_98, %c0_99, %c0_100] : memref<2x128x128xbf16, #tpu.memory_space<vmem>>, vector<1x128x128xbf16>
    %106 = vector.shape_cast %105 : vector<1x128x128xbf16> to vector<128x128xbf16>
    %cst_101 = arith.constant dense<0.000000e+00> : vector<8x128xf32>
    %107 = tpu.matmul %104, %106, %cst_101 {dimension_numbers = #tpu.dot_dimension_numbers<[1], [0], [0], [1], [0, 0, 1, 1], [], []>} : vector<8x128xbf16>, vector<128x128xbf16>, vector<8x128xf32> -> vector<8x128xf32>
    %108 = arith.addf %102, %107 : vector<8x128xf32>
    %c1_102 = arith.constant 1 : index
    %c0_103 = arith.constant 0 : index
    %c0_104 = arith.constant 0 : index
    %109 = vector.load %arg14[%c1_102, %c0_103, %c0_104] : memref<2x1x128xf32, #tpu.memory_space<vmem>>, vector<1x1x128xf32>
    %110 = vector.shape_cast %109 : vector<1x1x128xf32> to vector<1x128xf32>
    %111 = vector.broadcast %110 : vector<1x128xf32> to vector<8x128xf32>
    %112 = arith.addf %108, %111 : vector<8x128xf32>
    %113 = math.tanh %112 : vector<8x128xf32>
    %114 = arith.truncf %113 : vector<8x128xf32> to vector<8x128xbf16>
    %c1_105 = arith.constant 1 : index
    %c0_106 = arith.constant 0 : index
    %c0_107 = arith.constant 0 : index
    %115 = vector.load %arg10[%c1_105, %c0_106, %c0_107] : memref<2x8x128xbf16, #tpu.memory_space<vmem>>, vector<1x8x128xbf16>
    %116 = vector.shape_cast %115 : vector<1x8x128xbf16> to vector<8x128xbf16>
    %117 = vector.shape_cast %114 : vector<8x128xbf16> to vector<1x8x128xbf16>
    tpu.vector_store %arg10[%c1_105, %c0_106, %c0_107], %117 {strides = array<i32>} : memref<2x8x128xbf16, #tpu.memory_space<vmem>>, vector<1x8x128xbf16>,
    %c3 = arith.constant 3 : index
    %c0_108 = arith.constant 0 : index
    %c0_109 = arith.constant 0 : index
    %118 = vector.load %arg2[%c3, %c0_108, %c0_109] : memref<8x8x128xbf16, #tpu.memory_space<vmem>>, vector<1x8x128xbf16>
    %119 = vector.shape_cast %118 : vector<1x8x128xbf16> to vector<8x128xbf16>
    %c0_110 = arith.constant 0 : index
    %c0_111 = arith.constant 0 : index
    %120 = vector.load %arg11[%c0_110, %c0_111] : memref<128x128xbf16, #tpu.memory_space<vmem>>, vector<128x128xbf16>
    %cst_112 = arith.constant dense<0.000000e+00> : vector<8x128xf32>
    %121 = tpu.matmul %119, %120, %cst_112 {dimension_numbers = #tpu.dot_dimension_numbers<[1], [0], [0], [1], [0, 0, 1, 1], [], []>} : vector<8x128xbf16>, vector<128x128xbf16>, vector<8x128xf32> -> vector<8x128xf32>
    %c0_113 = arith.constant 0 : index
    %c0_114 = arith.constant 0 : index
    %c0_115 = arith.constant 0 : index
    %122 = vector.load %arg10[%c0_113, %c0_114, %c0_115] : memref<2x8x128xbf16, #tpu.memory_space<vmem>>, vector<1x8x128xbf16>
    %123 = vector.shape_cast %122 : vector<1x8x128xbf16> to vector<8x128xbf16>
    %c0_116 = arith.constant 0 : index
    %c0_117 = arith.constant 0 : index
    %c0_118 = arith.constant 0 : index
    %124 = vector.load %arg13[%c0_116, %c0_117, %c0_118] : memref<2x128x128xbf16, #tpu.memory_space<vmem>>, vector<1x128x128xbf16>
    %125 = vector.shape_cast %124 : vector<1x128x128xbf16> to vector<128x128xbf16>
    %cst_119 = arith.constant dense<0.000000e+00> : vector<8x128xf32>
    %126 = tpu.matmul %123, %125, %cst_119 {dimension_numbers = #tpu.dot_dimension_numbers<[1], [0], [0], [1], [0, 0, 1, 1], [], []>} : vector<8x128xbf16>, vector<128x128xbf16>, vector<8x128xf32> -> vector<8x128xf32>
    %127 = arith.addf %121, %126 : vector<8x128xf32>
    %c0_120 = arith.constant 0 : index
    %c0_121 = arith.constant 0 : index
    %c0_122 = arith.constant 0 : index
    %128 = vector.load %arg14[%c0_120, %c0_121, %c0_122] : memref<2x1x128xf32, #tpu.memory_space<vmem>>, vector<1x1x128xf32>
    %129 = vector.shape_cast %128 : vector<1x1x128xf32> to vector<1x128xf32>
    %130 = vector.broadcast %129 : vector<1x128xf32> to vector<8x128xf32>
    %131 = arith.addf %127, %130 : vector<8x128xf32>
    %132 = math.tanh %131 : vector<8x128xf32>
    %133 = arith.truncf %132 : vector<8x128xf32> to vector<8x128xbf16>
    %c0_123 = arith.constant 0 : index
    %c0_124 = arith.constant 0 : index
    %c0_125 = arith.constant 0 : index
    %134 = vector.load %arg10[%c0_123, %c0_124, %c0_125] : memref<2x8x128xbf16, #tpu.memory_space<vmem>>, vector<1x8x128xbf16>
    %135 = vector.shape_cast %134 : vector<1x8x128xbf16> to vector<8x128xbf16>
    %136 = vector.shape_cast %133 : vector<8x128xbf16> to vector<1x8x128xbf16>
    tpu.vector_store %arg10[%c0_123, %c0_124, %c0_125], %136 {strides = array<i32>} : memref<2x8x128xbf16, #tpu.memory_space<vmem>>, vector<1x8x128xbf16>,
    %c0_126 = arith.constant 0 : index
    %c0_127 = arith.constant 0 : index
    %c0_128 = arith.constant 0 : index
    %137 = vector.load %arg12[%c0_126, %c0_127, %c0_128] : memref<1x128x128xbf16, #tpu.memory_space<vmem>>, vector<1x128x128xbf16>
    %138 = vector.shape_cast %137 : vector<1x128x128xbf16> to vector<128x128xbf16>
    %cst_129 = arith.constant dense<0.000000e+00> : vector<8x128xf32>
    %139 = tpu.matmul %133, %138, %cst_129 {dimension_numbers = #tpu.dot_dimension_numbers<[1], [0], [0], [1], [0, 0, 1, 1], [], []>} : vector<8x128xbf16>, vector<128x128xbf16>, vector<8x128xf32> -> vector<8x128xf32>
    %c1_130 = arith.constant 1 : index
    %c0_131 = arith.constant 0 : index
    %c0_132 = arith.constant 0 : index
    %140 = vector.load %arg10[%c1_130, %c0_131, %c0_132] : memref<2x8x128xbf16, #tpu.memory_space<vmem>>, vector<1x8x128xbf16>
    %141 = vector.shape_cast %140 : vector<1x8x128xbf16> to vector<8x128xbf16>
    %c1_133 = arith.constant 1 : index
    %c0_134 = arith.constant 0 : index
    %c0_135 = arith.constant 0 : index
    %142 = vector.load %arg13[%c1_133, %c0_134, %c0_135] : memref<2x128x128xbf16, #tpu.memory_space<vmem>>, vector<1x128x128xbf16>
    %143 = vector.shape_cast %142 : vector<1x128x128xbf16> to vector<128x128xbf16>
    %cst_136 = arith.constant dense<0.000000e+00> : vector<8x128xf32>
    %144 = tpu.matmul %141, %143, %cst_136 {dimension_numbers = #tpu.dot_dimension_numbers<[1], [0], [0], [1], [0, 0, 1, 1], [], []>} : vector<8x128xbf16>, vector<128x128xbf16>, vector<8x128xf32> -> vector<8x128xf32>
    %145 = arith.addf %139, %144 : vector<8x128xf32>
    %c1_137 = arith.constant 1 : index
    %c0_138 = arith.constant 0 : index
    %c0_139 = arith.constant 0 : index
    %146 = vector.load %arg14[%c1_137, %c0_138, %c0_139] : memref<2x1x128xf32, #tpu.memory_space<vmem>>, vector<1x1x128xf32>
    %147 = vector.shape_cast %146 : vector<1x1x128xf32> to vector<1x128xf32>
    %148 = vector.broadcast %147 : vector<1x128xf32> to vector<8x128xf32>
    %149 = arith.addf %145, %148 : vector<8x128xf32>
    %150 = math.tanh %149 : vector<8x128xf32>
    %151 = arith.truncf %150 : vector<8x128xf32> to vector<8x128xbf16>
    %c1_140 = arith.constant 1 : index
    %c0_141 = arith.constant 0 : index
    %c0_142 = arith.constant 0 : index
    %152 = vector.load %arg10[%c1_140, %c0_141, %c0_142] : memref<2x8x128xbf16, #tpu.memory_space<vmem>>, vector<1x8x128xbf16>
    %153 = vector.shape_cast %152 : vector<1x8x128xbf16> to vector<8x128xbf16>
    %154 = vector.shape_cast %151 : vector<8x128xbf16> to vector<1x8x128xbf16>
    tpu.vector_store %arg10[%c1_140, %c0_141, %c0_142], %154 {strides = array<i32>} : memref<2x8x128xbf16, #tpu.memory_space<vmem>>, vector<1x8x128xbf16>,
    %c4 = arith.constant 4 : index
    %c0_143 = arith.constant 0 : index
    %c0_144 = arith.constant 0 : index
    %155 = vector.load %arg2[%c4, %c0_143, %c0_144] : memref<8x8x128xbf16, #tpu.memory_space<vmem>>, vector<1x8x128xbf16>
    %156 = vector.shape_cast %155 : vector<1x8x128xbf16> to vector<8x128xbf16>
    %c0_145 = arith.constant 0 : index
    %c0_146 = arith.constant 0 : index
    %157 = vector.load %arg11[%c0_145, %c0_146] : memref<128x128xbf16, #tpu.memory_space<vmem>>, vector<128x128xbf16>
    %cst_147 = arith.constant dense<0.000000e+00> : vector<8x128xf32>
    %158 = tpu.matmul %156, %157, %cst_147 {dimension_numbers = #tpu.dot_dimension_numbers<[1], [0], [0], [1], [0, 0, 1, 1], [], []>} : vector<8x128xbf16>, vector<128x128xbf16>, vector<8x128xf32> -> vector<8x128xf32>
    %c0_148 = arith.constant 0 : index
    %c0_149 = arith.constant 0 : index
    %c0_150 = arith.constant 0 : index
    %159 = vector.load %arg10[%c0_148, %c0_149, %c0_150] : memref<2x8x128xbf16, #tpu.memory_space<vmem>>, vector<1x8x128xbf16>
    %160 = vector.shape_cast %159 : vector<1x8x128xbf16> to vector<8x128xbf16>
    %c0_151 = arith.constant 0 : index
    %c0_152 = arith.constant 0 : index
    %c0_153 = arith.constant 0 : index
    %161 = vector.load %arg13[%c0_151, %c0_152, %c0_153] : memref<2x128x128xbf16, #tpu.memory_space<vmem>>, vector<1x128x128xbf16>
    %162 = vector.shape_cast %161 : vector<1x128x128xbf16> to vector<128x128xbf16>
    %cst_154 = arith.constant dense<0.000000e+00> : vector<8x128xf32>
    %163 = tpu.matmul %160, %162, %cst_154 {dimension_numbers = #tpu.dot_dimension_numbers<[1], [0], [0], [1], [0, 0, 1, 1], [], []>} : vector<8x128xbf16>, vector<128x128xbf16>, vector<8x128xf32> -> vector<8x128xf32>
    %164 = arith.addf %158, %163 : vector<8x128xf32>
    %c0_155 = arith.constant 0 : index
    %c0_156 = arith.constant 0 : index
    %c0_157 = arith.constant 0 : index
    %165 = vector.load %arg14[%c0_155, %c0_156, %c0_157] : memref<2x1x128xf32, #tpu.memory_space<vmem>>, vector<1x1x128xf32>
    %166 = vector.shape_cast %165 : vector<1x1x128xf32> to vector<1x128xf32>
    %167 = vector.broadcast %166 : vector<1x128xf32> to vector<8x128xf32>
    %168 = arith.addf %164, %167 : vector<8x128xf32>
    %169 = math.tanh %168 : vector<8x128xf32>
    %170 = arith.truncf %169 : vector<8x128xf32> to vector<8x128xbf16>
    %c0_158 = arith.constant 0 : index
    %c0_159 = arith.constant 0 : index
    %c0_160 = arith.constant 0 : index
    %171 = vector.load %arg10[%c0_158, %c0_159, %c0_160] : memref<2x8x128xbf16, #tpu.memory_space<vmem>>, vector<1x8x128xbf16>
    %172 = vector.shape_cast %171 : vector<1x8x128xbf16> to vector<8x128xbf16>
    %173 = vector.shape_cast %170 : vector<8x128xbf16> to vector<1x8x128xbf16>
    tpu.vector_store %arg10[%c0_158, %c0_159, %c0_160], %173 {strides = array<i32>} : memref<2x8x128xbf16, #tpu.memory_space<vmem>>, vector<1x8x128xbf16>,
    %c0_161 = arith.constant 0 : index
    %c0_162 = arith.constant 0 : index
    %c0_163 = arith.constant 0 : index
    %174 = vector.load %arg12[%c0_161, %c0_162, %c0_163] : memref<1x128x128xbf16, #tpu.memory_space<vmem>>, vector<1x128x128xbf16>
    %175 = vector.shape_cast %174 : vector<1x128x128xbf16> to vector<128x128xbf16>
    %cst_164 = arith.constant dense<0.000000e+00> : vector<8x128xf32>
    %176 = tpu.matmul %170, %175, %cst_164 {dimension_numbers = #tpu.dot_dimension_numbers<[1], [0], [0], [1], [0, 0, 1, 1], [], []>} : vector<8x128xbf16>, vector<128x128xbf16>, vector<8x128xf32> -> vector<8x128xf32>
    %c1_165 = arith.constant 1 : index
    %c0_166 = arith.constant 0 : index
    %c0_167 = arith.constant 0 : index
    %177 = vector.load %arg10[%c1_165, %c0_166, %c0_167] : memref<2x8x128xbf16, #tpu.memory_space<vmem>>, vector<1x8x128xbf16>
    %178 = vector.shape_cast %177 : vector<1x8x128xbf16> to vector<8x128xbf16>
    %c1_168 = arith.constant 1 : index
    %c0_169 = arith.constant 0 : index
    %c0_170 = arith.constant 0 : index
    %179 = vector.load %arg13[%c1_168, %c0_169, %c0_170] : memref<2x128x128xbf16, #tpu.memory_space<vmem>>, vector<1x128x128xbf16>
    %180 = vector.shape_cast %179 : vector<1x128x128xbf16> to vector<128x128xbf16>
    %cst_171 = arith.constant dense<0.000000e+00> : vector<8x128xf32>
    %181 = tpu.matmul %178, %180, %cst_171 {dimension_numbers = #tpu.dot_dimension_numbers<[1], [0], [0], [1], [0, 0, 1, 1], [], []>} : vector<8x128xbf16>, vector<128x128xbf16>, vector<8x128xf32> -> vector<8x128xf32>
    %182 = arith.addf %176, %181 : vector<8x128xf32>
    %c1_172 = arith.constant 1 : index
    %c0_173 = arith.constant 0 : index
    %c0_174 = arith.constant 0 : index
    %183 = vector.load %arg14[%c1_172, %c0_173, %c0_174] : memref<2x1x128xf32, #tpu.memory_space<vmem>>, vector<1x1x128xf32>
    %184 = vector.shape_cast %183 : vector<1x1x128xf32> to vector<1x128xf32>
    %185 = vector.broadcast %184 : vector<1x128xf32> to vector<8x128xf32>
    %186 = arith.addf %182, %185 : vector<8x128xf32>
    %187 = math.tanh %186 : vector<8x128xf32>
    %188 = arith.truncf %187 : vector<8x128xf32> to vector<8x128xbf16>
    %c1_175 = arith.constant 1 : index
    %c0_176 = arith.constant 0 : index
    %c0_177 = arith.constant 0 : index
    %189 = vector.load %arg10[%c1_175, %c0_176, %c0_177] : memref<2x8x128xbf16, #tpu.memory_space<vmem>>, vector<1x8x128xbf16>
    %190 = vector.shape_cast %189 : vector<1x8x128xbf16> to vector<8x128xbf16>
    %191 = vector.shape_cast %188 : vector<8x128xbf16> to vector<1x8x128xbf16>
    tpu.vector_store %arg10[%c1_175, %c0_176, %c0_177], %191 {strides = array<i32>} : memref<2x8x128xbf16, #tpu.memory_space<vmem>>, vector<1x8x128xbf16>,
    %c5 = arith.constant 5 : index
    %c0_178 = arith.constant 0 : index
    %c0_179 = arith.constant 0 : index
    %192 = vector.load %arg2[%c5, %c0_178, %c0_179] : memref<8x8x128xbf16, #tpu.memory_space<vmem>>, vector<1x8x128xbf16>
    %193 = vector.shape_cast %192 : vector<1x8x128xbf16> to vector<8x128xbf16>
    %c0_180 = arith.constant 0 : index
    %c0_181 = arith.constant 0 : index
    %194 = vector.load %arg11[%c0_180, %c0_181] : memref<128x128xbf16, #tpu.memory_space<vmem>>, vector<128x128xbf16>
    %cst_182 = arith.constant dense<0.000000e+00> : vector<8x128xf32>
    %195 = tpu.matmul %193, %194, %cst_182 {dimension_numbers = #tpu.dot_dimension_numbers<[1], [0], [0], [1], [0, 0, 1, 1], [], []>} : vector<8x128xbf16>, vector<128x128xbf16>, vector<8x128xf32> -> vector<8x128xf32>
    %c0_183 = arith.constant 0 : index
    %c0_184 = arith.constant 0 : index
    %c0_185 = arith.constant 0 : index
    %196 = vector.load %arg10[%c0_183, %c0_184, %c0_185] : memref<2x8x128xbf16, #tpu.memory_space<vmem>>, vector<1x8x128xbf16>
    %197 = vector.shape_cast %196 : vector<1x8x128xbf16> to vector<8x128xbf16>
    %c0_186 = arith.constant 0 : index
    %c0_187 = arith.constant 0 : index
    %c0_188 = arith.constant 0 : index
    %198 = vector.load %arg13[%c0_186, %c0_187, %c0_188] : memref<2x128x128xbf16, #tpu.memory_space<vmem>>, vector<1x128x128xbf16>
    %199 = vector.shape_cast %198 : vector<1x128x128xbf16> to vector<128x128xbf16>
    %cst_189 = arith.constant dense<0.000000e+00> : vector<8x128xf32>
    %200 = tpu.matmul %197, %199, %cst_189 {dimension_numbers = #tpu.dot_dimension_numbers<[1], [0], [0], [1], [0, 0, 1, 1], [], []>} : vector<8x128xbf16>, vector<128x128xbf16>, vector<8x128xf32> -> vector<8x128xf32>
    %201 = arith.addf %195, %200 : vector<8x128xf32>
    %c0_190 = arith.constant 0 : index
    %c0_191 = arith.constant 0 : index
    %c0_192 = arith.constant 0 : index
    %202 = vector.load %arg14[%c0_190, %c0_191, %c0_192] : memref<2x1x128xf32, #tpu.memory_space<vmem>>, vector<1x1x128xf32>
    %203 = vector.shape_cast %202 : vector<1x1x128xf32> to vector<1x128xf32>
    %204 = vector.broadcast %203 : vector<1x128xf32> to vector<8x128xf32>
    %205 = arith.addf %201, %204 : vector<8x128xf32>
    %206 = math.tanh %205 : vector<8x128xf32>
    %207 = arith.truncf %206 : vector<8x128xf32> to vector<8x128xbf16>
    %c0_193 = arith.constant 0 : index
    %c0_194 = arith.constant 0 : index
    %c0_195 = arith.constant 0 : index
    %208 = vector.load %arg10[%c0_193, %c0_194, %c0_195] : memref<2x8x128xbf16, #tpu.memory_space<vmem>>, vector<1x8x128xbf16>
    %209 = vector.shape_cast %208 : vector<1x8x128xbf16> to vector<8x128xbf16>
    %210 = vector.shape_cast %207 : vector<8x128xbf16> to vector<1x8x128xbf16>
    tpu.vector_store %arg10[%c0_193, %c0_194, %c0_195], %210 {strides = array<i32>} : memref<2x8x128xbf16, #tpu.memory_space<vmem>>, vector<1x8x128xbf16>,
    %c0_196 = arith.constant 0 : index
    %c0_197 = arith.constant 0 : index
    %c0_198 = arith.constant 0 : index
    %211 = vector.load %arg12[%c0_196, %c0_197, %c0_198] : memref<1x128x128xbf16, #tpu.memory_space<vmem>>, vector<1x128x128xbf16>
    %212 = vector.shape_cast %211 : vector<1x128x128xbf16> to vector<128x128xbf16>
    %cst_199 = arith.constant dense<0.000000e+00> : vector<8x128xf32>
    %213 = tpu.matmul %207, %212, %cst_199 {dimension_numbers = #tpu.dot_dimension_numbers<[1], [0], [0], [1], [0, 0, 1, 1], [], []>} : vector<8x128xbf16>, vector<128x128xbf16>, vector<8x128xf32> -> vector<8x128xf32>
    %c1_200 = arith.constant 1 : index
    %c0_201 = arith.constant 0 : index
    %c0_202 = arith.constant 0 : index
    %214 = vector.load %arg10[%c1_200, %c0_201, %c0_202] : memref<2x8x128xbf16, #tpu.memory_space<vmem>>, vector<1x8x128xbf16>
    %215 = vector.shape_cast %214 : vector<1x8x128xbf16> to vector<8x128xbf16>
    %c1_203 = arith.constant 1 : index
    %c0_204 = arith.constant 0 : index
    %c0_205 = arith.constant 0 : index
    %216 = vector.load %arg13[%c1_203, %c0_204, %c0_205] : memref<2x128x128xbf16, #tpu.memory_space<vmem>>, vector<1x128x128xbf16>
    %217 = vector.shape_cast %216 : vector<1x128x128xbf16> to vector<128x128xbf16>
    %cst_206 = arith.constant dense<0.000000e+00> : vector<8x128xf32>
    %218 = tpu.matmul %215, %217, %cst_206 {dimension_numbers = #tpu.dot_dimension_numbers<[1], [0], [0], [1], [0, 0, 1, 1], [], []>} : vector<8x128xbf16>, vector<128x128xbf16>, vector<8x128xf32> -> vector<8x128xf32>
    %219 = arith.addf %213, %218 : vector<8x128xf32>
    %c1_207 = arith.constant 1 : index
    %c0_208 = arith.constant 0 : index
    %c0_209 = arith.constant 0 : index
    %220 = vector.load %arg14[%c1_207, %c0_208, %c0_209] : memref<2x1x128xf32, #tpu.memory_space<vmem>>, vector<1x1x128xf32>
    %221 = vector.shape_cast %220 : vector<1x1x128xf32> to vector<1x128xf32>
    %222 = vector.broadcast %221 : vector<1x128xf32> to vector<8x128xf32>
    %223 = arith.addf %219, %222 : vector<8x128xf32>
    %224 = math.tanh %223 : vector<8x128xf32>
    %225 = arith.truncf %224 : vector<8x128xf32> to vector<8x128xbf16>
    %c1_210 = arith.constant 1 : index
    %c0_211 = arith.constant 0 : index
    %c0_212 = arith.constant 0 : index
    %226 = vector.load %arg10[%c1_210, %c0_211, %c0_212] : memref<2x8x128xbf16, #tpu.memory_space<vmem>>, vector<1x8x128xbf16>
    %227 = vector.shape_cast %226 : vector<1x8x128xbf16> to vector<8x128xbf16>
    %228 = vector.shape_cast %225 : vector<8x128xbf16> to vector<1x8x128xbf16>
    tpu.vector_store %arg10[%c1_210, %c0_211, %c0_212], %228 {strides = array<i32>} : memref<2x8x128xbf16, #tpu.memory_space<vmem>>, vector<1x8x128xbf16>,
    %c6 = arith.constant 6 : index
    %c0_213 = arith.constant 0 : index
    %c0_214 = arith.constant 0 : index
    %229 = vector.load %arg2[%c6, %c0_213, %c0_214] : memref<8x8x128xbf16, #tpu.memory_space<vmem>>, vector<1x8x128xbf16>
    %230 = vector.shape_cast %229 : vector<1x8x128xbf16> to vector<8x128xbf16>
    %c0_215 = arith.constant 0 : index
    %c0_216 = arith.constant 0 : index
    %231 = vector.load %arg11[%c0_215, %c0_216] : memref<128x128xbf16, #tpu.memory_space<vmem>>, vector<128x128xbf16>
    %cst_217 = arith.constant dense<0.000000e+00> : vector<8x128xf32>
    %232 = tpu.matmul %230, %231, %cst_217 {dimension_numbers = #tpu.dot_dimension_numbers<[1], [0], [0], [1], [0, 0, 1, 1], [], []>} : vector<8x128xbf16>, vector<128x128xbf16>, vector<8x128xf32> -> vector<8x128xf32>
    %c0_218 = arith.constant 0 : index
    %c0_219 = arith.constant 0 : index
    %c0_220 = arith.constant 0 : index
    %233 = vector.load %arg10[%c0_218, %c0_219, %c0_220] : memref<2x8x128xbf16, #tpu.memory_space<vmem>>, vector<1x8x128xbf16>
    %234 = vector.shape_cast %233 : vector<1x8x128xbf16> to vector<8x128xbf16>
    %c0_221 = arith.constant 0 : index
    %c0_222 = arith.constant 0 : index
    %c0_223 = arith.constant 0 : index
    %235 = vector.load %arg13[%c0_221, %c0_222, %c0_223] : memref<2x128x128xbf16, #tpu.memory_space<vmem>>, vector<1x128x128xbf16>
    %236 = vector.shape_cast %235 : vector<1x128x128xbf16> to vector<128x128xbf16>
    %cst_224 = arith.constant dense<0.000000e+00> : vector<8x128xf32>
    %237 = tpu.matmul %234, %236, %cst_224 {dimension_numbers = #tpu.dot_dimension_numbers<[1], [0], [0], [1], [0, 0, 1, 1], [], []>} : vector<8x128xbf16>, vector<128x128xbf16>, vector<8x128xf32> -> vector<8x128xf32>
    %238 = arith.addf %232, %237 : vector<8x128xf32>
    %c0_225 = arith.constant 0 : index
    %c0_226 = arith.constant 0 : index
    %c0_227 = arith.constant 0 : index
    %239 = vector.load %arg14[%c0_225, %c0_226, %c0_227] : memref<2x1x128xf32, #tpu.memory_space<vmem>>, vector<1x1x128xf32>
    %240 = vector.shape_cast %239 : vector<1x1x128xf32> to vector<1x128xf32>
    %241 = vector.broadcast %240 : vector<1x128xf32> to vector<8x128xf32>
    %242 = arith.addf %238, %241 : vector<8x128xf32>
    %243 = math.tanh %242 : vector<8x128xf32>
    %244 = arith.truncf %243 : vector<8x128xf32> to vector<8x128xbf16>
    %c0_228 = arith.constant 0 : index
    %c0_229 = arith.constant 0 : index
    %c0_230 = arith.constant 0 : index
    %245 = vector.load %arg10[%c0_228, %c0_229, %c0_230] : memref<2x8x128xbf16, #tpu.memory_space<vmem>>, vector<1x8x128xbf16>
    %246 = vector.shape_cast %245 : vector<1x8x128xbf16> to vector<8x128xbf16>
    %247 = vector.shape_cast %244 : vector<8x128xbf16> to vector<1x8x128xbf16>
    tpu.vector_store %arg10[%c0_228, %c0_229, %c0_230], %247 {strides = array<i32>} : memref<2x8x128xbf16, #tpu.memory_space<vmem>>, vector<1x8x128xbf16>,
    %c0_231 = arith.constant 0 : index
    %c0_232 = arith.constant 0 : index
    %c0_233 = arith.constant 0 : index
    %248 = vector.load %arg12[%c0_231, %c0_232, %c0_233] : memref<1x128x128xbf16, #tpu.memory_space<vmem>>, vector<1x128x128xbf16>
    %249 = vector.shape_cast %248 : vector<1x128x128xbf16> to vector<128x128xbf16>
    %cst_234 = arith.constant dense<0.000000e+00> : vector<8x128xf32>
    %250 = tpu.matmul %244, %249, %cst_234 {dimension_numbers = #tpu.dot_dimension_numbers<[1], [0], [0], [1], [0, 0, 1, 1], [], []>} : vector<8x128xbf16>, vector<128x128xbf16>, vector<8x128xf32> -> vector<8x128xf32>
    %c1_235 = arith.constant 1 : index
    %c0_236 = arith.constant 0 : index
    %c0_237 = arith.constant 0 : index
    %251 = vector.load %arg10[%c1_235, %c0_236, %c0_237] : memref<2x8x128xbf16, #tpu.memory_space<vmem>>, vector<1x8x128xbf16>
    %252 = vector.shape_cast %251 : vector<1x8x128xbf16> to vector<8x128xbf16>
    %c1_238 = arith.constant 1 : index
    %c0_239 = arith.constant 0 : index
    %c0_240 = arith.constant 0 : index
    %253 = vector.load %arg13[%c1_238, %c0_239, %c0_240] : memref<2x128x128xbf16, #tpu.memory_space<vmem>>, vector<1x128x128xbf16>
    %254 = vector.shape_cast %253 : vector<1x128x128xbf16> to vector<128x128xbf16>
    %cst_241 = arith.constant dense<0.000000e+00> : vector<8x128xf32>
    %255 = tpu.matmul %252, %254, %cst_241 {dimension_numbers = #tpu.dot_dimension_numbers<[1], [0], [0], [1], [0, 0, 1, 1], [], []>} : vector<8x128xbf16>, vector<128x128xbf16>, vector<8x128xf32> -> vector<8x128xf32>
    %256 = arith.addf %250, %255 : vector<8x128xf32>
    %c1_242 = arith.constant 1 : index
    %c0_243 = arith.constant 0 : index
    %c0_244 = arith.constant 0 : index
    %257 = vector.load %arg14[%c1_242, %c0_243, %c0_244] : memref<2x1x128xf32, #tpu.memory_space<vmem>>, vector<1x1x128xf32>
    %258 = vector.shape_cast %257 : vector<1x1x128xf32> to vector<1x128xf32>
    %259 = vector.broadcast %258 : vector<1x128xf32> to vector<8x128xf32>
    %260 = arith.addf %256, %259 : vector<8x128xf32>
    %261 = math.tanh %260 : vector<8x128xf32>
    %262 = arith.truncf %261 : vector<8x128xf32> to vector<8x128xbf16>
    %c1_245 = arith.constant 1 : index
    %c0_246 = arith.constant 0 : index
    %c0_247 = arith.constant 0 : index
    %263 = vector.load %arg10[%c1_245, %c0_246, %c0_247] : memref<2x8x128xbf16, #tpu.memory_space<vmem>>, vector<1x8x128xbf16>
    %264 = vector.shape_cast %263 : vector<1x8x128xbf16> to vector<8x128xbf16>
    %265 = vector.shape_cast %262 : vector<8x128xbf16> to vector<1x8x128xbf16>
    tpu.vector_store %arg10[%c1_245, %c0_246, %c0_247], %265 {strides = array<i32>} : memref<2x8x128xbf16, #tpu.memory_space<vmem>>, vector<1x8x128xbf16>,
    %c7 = arith.constant 7 : index
    %c0_248 = arith.constant 0 : index
    %c0_249 = arith.constant 0 : index
    %266 = vector.load %arg2[%c7, %c0_248, %c0_249] : memref<8x8x128xbf16, #tpu.memory_space<vmem>>, vector<1x8x128xbf16>
    %267 = vector.shape_cast %266 : vector<1x8x128xbf16> to vector<8x128xbf16>
    %c0_250 = arith.constant 0 : index
    %c0_251 = arith.constant 0 : index
    %268 = vector.load %arg11[%c0_250, %c0_251] : memref<128x128xbf16, #tpu.memory_space<vmem>>, vector<128x128xbf16>
    %cst_252 = arith.constant dense<0.000000e+00> : vector<8x128xf32>
    %269 = tpu.matmul %267, %268, %cst_252 {dimension_numbers = #tpu.dot_dimension_numbers<[1], [0], [0], [1], [0, 0, 1, 1], [], []>} : vector<8x128xbf16>, vector<128x128xbf16>, vector<8x128xf32> -> vector<8x128xf32>
    %c0_253 = arith.constant 0 : index
    %c0_254 = arith.constant 0 : index
    %c0_255 = arith.constant 0 : index
    %270 = vector.load %arg10[%c0_253, %c0_254, %c0_255] : memref<2x8x128xbf16, #tpu.memory_space<vmem>>, vector<1x8x128xbf16>
    %271 = vector.shape_cast %270 : vector<1x8x128xbf16> to vector<8x128xbf16>
    %c0_256 = arith.constant 0 : index
    %c0_257 = arith.constant 0 : index
    %c0_258 = arith.constant 0 : index
    %272 = vector.load %arg13[%c0_256, %c0_257, %c0_258] : memref<2x128x128xbf16, #tpu.memory_space<vmem>>, vector<1x128x128xbf16>
    %273 = vector.shape_cast %272 : vector<1x128x128xbf16> to vector<128x128xbf16>
    %cst_259 = arith.constant dense<0.000000e+00> : vector<8x128xf32>
    %274 = tpu.matmul %271, %273, %cst_259 {dimension_numbers = #tpu.dot_dimension_numbers<[1], [0], [0], [1], [0, 0, 1, 1], [], []>} : vector<8x128xbf16>, vector<128x128xbf16>, vector<8x128xf32> -> vector<8x128xf32>
    %275 = arith.addf %269, %274 : vector<8x128xf32>
    %c0_260 = arith.constant 0 : index
    %c0_261 = arith.constant 0 : index
    %c0_262 = arith.constant 0 : index
    %276 = vector.load %arg14[%c0_260, %c0_261, %c0_262] : memref<2x1x128xf32, #tpu.memory_space<vmem>>, vector<1x1x128xf32>
    %277 = vector.shape_cast %276 : vector<1x1x128xf32> to vector<1x128xf32>
    %278 = vector.broadcast %277 : vector<1x128xf32> to vector<8x128xf32>
    %279 = arith.addf %275, %278 : vector<8x128xf32>
    %280 = math.tanh %279 : vector<8x128xf32>
    %281 = arith.truncf %280 : vector<8x128xf32> to vector<8x128xbf16>
    %c0_263 = arith.constant 0 : index
    %c0_264 = arith.constant 0 : index
    %c0_265 = arith.constant 0 : index
    %282 = vector.load %arg10[%c0_263, %c0_264, %c0_265] : memref<2x8x128xbf16, #tpu.memory_space<vmem>>, vector<1x8x128xbf16>
    %283 = vector.shape_cast %282 : vector<1x8x128xbf16> to vector<8x128xbf16>
    %284 = vector.shape_cast %281 : vector<8x128xbf16> to vector<1x8x128xbf16>
    tpu.vector_store %arg10[%c0_263, %c0_264, %c0_265], %284 {strides = array<i32>} : memref<2x8x128xbf16, #tpu.memory_space<vmem>>, vector<1x8x128xbf16>,
    %c0_266 = arith.constant 0 : index
    %c0_267 = arith.constant 0 : index
    %c0_268 = arith.constant 0 : index
    %285 = vector.load %arg12[%c0_266, %c0_267, %c0_268] : memref<1x128x128xbf16, #tpu.memory_space<vmem>>, vector<1x128x128xbf16>
    %286 = vector.shape_cast %285 : vector<1x128x128xbf16> to vector<128x128xbf16>
    %cst_269 = arith.constant dense<0.000000e+00> : vector<8x128xf32>
    %287 = tpu.matmul %281, %286, %cst_269 {dimension_numbers = #tpu.dot_dimension_numbers<[1], [0], [0], [1], [0, 0, 1, 1], [], []>} : vector<8x128xbf16>, vector<128x128xbf16>, vector<8x128xf32> -> vector<8x128xf32>
    %c1_270 = arith.constant 1 : index
    %c0_271 = arith.constant 0 : index
    %c0_272 = arith.constant 0 : index
    %288 = vector.load %arg10[%c1_270, %c0_271, %c0_272] : memref<2x8x128xbf16, #tpu.memory_space<vmem>>, vector<1x8x128xbf16>
    %289 = vector.shape_cast %288 : vector<1x8x128xbf16> to vector<8x128xbf16>
    %c1_273 = arith.constant 1 : index
    %c0_274 = arith.constant 0 : index
    %c0_275 = arith.constant 0 : index
    %290 = vector.load %arg13[%c1_273, %c0_274, %c0_275] : memref<2x128x128xbf16, #tpu.memory_space<vmem>>, vector<1x128x128xbf16>
    %291 = vector.shape_cast %290 : vector<1x128x128xbf16> to vector<128x128xbf16>
    %cst_276 = arith.constant dense<0.000000e+00> : vector<8x128xf32>
    %292 = tpu.matmul %289, %291, %cst_276 {dimension_numbers = #tpu.dot_dimension_numbers<[1], [0], [0], [1], [0, 0, 1, 1], [], []>} : vector<8x128xbf16>, vector<128x128xbf16>, vector<8x128xf32> -> vector<8x128xf32>
    %293 = arith.addf %287, %292 : vector<8x128xf32>
    %c1_277 = arith.constant 1 : index
    %c0_278 = arith.constant 0 : index
    %c0_279 = arith.constant 0 : index
    %294 = vector.load %arg14[%c1_277, %c0_278, %c0_279] : memref<2x1x128xf32, #tpu.memory_space<vmem>>, vector<1x1x128xf32>
    %295 = vector.shape_cast %294 : vector<1x1x128xf32> to vector<1x128xf32>
    %296 = vector.broadcast %295 : vector<1x128xf32> to vector<8x128xf32>
    %297 = arith.addf %293, %296 : vector<8x128xf32>
    %298 = math.tanh %297 : vector<8x128xf32>
    %299 = arith.truncf %298 : vector<8x128xf32> to vector<8x128xbf16>
    %c1_280 = arith.constant 1 : index
    %c0_281 = arith.constant 0 : index
    %c0_282 = arith.constant 0 : index
    %300 = vector.load %arg10[%c1_280, %c0_281, %c0_282] : memref<2x8x128xbf16, #tpu.memory_space<vmem>>, vector<1x8x128xbf16>
    %301 = vector.shape_cast %300 : vector<1x8x128xbf16> to vector<8x128xbf16>
    %302 = vector.shape_cast %299 : vector<8x128xbf16> to vector<1x8x128xbf16>
    tpu.vector_store %arg10[%c1_280, %c0_281, %c0_282], %302 {strides = array<i32>} : memref<2x8x128xbf16, #tpu.memory_space<vmem>>, vector<1x8x128xbf16>,
    %303 = arith.extui %1 : i1 to i32
    %c0_i32_283 = arith.constant 0 : i32
    %304 = arith.cmpi ne, %303, %c0_i32_283 : i32
    scf.if %304 {
      %c4_i32 = arith.constant 4 : i32
      %308 = tpu.memref_slice %arg17[%c4_i32] : memref<6x!tpu.dma_semaphore, #tpu.memory_space<semaphore_mem>> -> memref<1x!tpu.dma_semaphore, #tpu.memory_space<semaphore_mem>>
      %309 = tpu.memref_squeeze %308 : memref<1x!tpu.dma_semaphore, #tpu.memory_space<semaphore_mem>> -> memref<!tpu.dma_semaphore, #tpu.memory_space<semaphore_mem>>
      tpu.wait_dma2 semaphore(%309 : memref<!tpu.dma_semaphore, #tpu.memory_space<semaphore_mem>>) src(%arg7 : memref<128x128xbf16, #tpu.memory_space<any>>) dst(%arg15 : memref<128x128xbf16, #tpu.memory_space<vmem>>)
      %c5_i32 = arith.constant 5 : i32
      %310 = tpu.memref_slice %arg17[%c5_i32] : memref<6x!tpu.dma_semaphore, #tpu.memory_space<semaphore_mem>> -> memref<1x!tpu.dma_semaphore, #tpu.memory_space<semaphore_mem>>
      %311 = tpu.memref_squeeze %310 : memref<1x!tpu.dma_semaphore, #tpu.memory_space<semaphore_mem>> -> memref<!tpu.dma_semaphore, #tpu.memory_space<semaphore_mem>>
      tpu.wait_dma2 semaphore(%311 : memref<!tpu.dma_semaphore, #tpu.memory_space<semaphore_mem>>) src(%arg8 : memref<1x128xf32, #tpu.memory_space<any>>) dst(%arg16 : memref<1x128xf32, #tpu.memory_space<vmem>>)
    } else {
    }
    %c0_i32_284 = arith.constant 0 : i32
    %305 = arith.cmpi eq, %arg1, %c0_i32_284 : i32
    %306 = arith.extui %305 : i1 to i32
    %c0_i32_285 = arith.constant 0 : i32
    %307 = arith.cmpi ne, %306, %c0_i32_285 : i32
    scf.if %307 {
      %c1_286 = arith.constant 1 : index
      %c0_287 = arith.constant 0 : index
      %c0_288 = arith.constant 0 : index
      %308 = vector.load %arg10[%c1_286, %c0_287, %c0_288] : memref<2x8x128xbf16, #tpu.memory_space<vmem>>, vector<1x8x128xbf16>
      %309 = vector.shape_cast %308 : vector<1x8x128xbf16> to vector<8x128xbf16>
      %c0_289 = arith.constant 0 : index
      %c0_290 = arith.constant 0 : index
      %310 = vector.load %arg15[%c0_289, %c0_290] : memref<128x128xbf16, #tpu.memory_space<vmem>>, vector<128x128xbf16>
      %cst_291 = arith.constant dense<0.000000e+00> : vector<8x128xf32>
      %311 = tpu.matmul %309, %310, %cst_291 {dimension_numbers = #tpu.dot_dimension_numbers<[1], [0], [0], [1], [0, 0, 1, 1], [], []>} : vector<8x128xbf16>, vector<128x128xbf16>, vector<8x128xf32> -> vector<8x128xf32>
      %c0_292 = arith.constant 0 : index
      %c0_293 = arith.constant 0 : index
      %312 = vector.load %arg16[%c0_292, %c0_293] : memref<1x128xf32, #tpu.memory_space<vmem>>, vector<1x128xf32>
      %313 = vector.broadcast %312 : vector<1x128xf32> to vector<8x128xf32>
      %314 = arith.addf %311, %313 : vector<8x128xf32>
      %cst_294 = arith.constant dense<0xFF800000> : vector<8xf32>
      %315 = vector.multi_reduction <maximumf>, %314, %cst_294 [1] : vector<8x128xf32> to vector<8xf32>
      %316 = vector.shape_cast %315 : vector<8xf32> to vector<8x1xf32>
      %317 = vector.broadcast %316 : vector<8x1xf32> to vector<8x128xf32>
      %318 = arith.subf %314, %317 : vector<8x128xf32>
      %319 = math.exp %318 : vector<8x128xf32>
      %cst_295 = arith.constant dense<0.000000e+00> : vector<8xf32>
      %320 = vector.multi_reduction <add>, %319, %cst_295 [1] : vector<8x128xf32> to vector<8xf32>
      %321 = vector.shape_cast %320 : vector<8xf32> to vector<8x1xf32>
      %322 = vector.broadcast %321 : vector<8x1xf32> to vector<8x128xf32>
      %323 = arith.divf %319, %322 : vector<8x128xf32>
      %c0_296 = arith.constant 0 : index
      %c0_297 = arith.constant 0 : index
      %324 = vector.load %arg9[%c0_296, %c0_297] : memref<8x128xf32, #tpu.memory_space<vmem>>, vector<8x128xf32>
      tpu.vector_store %arg9[%c0_296, %c0_297], %323 {strides = array<i32>} : memref<8x128xf32, #tpu.memory_space<vmem>>, vector<8x128xf32>,
    } else {
    }
    return
  }
  func.func @transform_0(%arg0: i32, %arg1: i32) -> (i32, i32, i32) {
    %c0_i32 = arith.constant 0 : i32
    %c0_i32_0 = arith.constant 0 : i32
    return %arg1, %arg0, %c0_i32 : i32, i32, i32
  }
  func.func @transform_7(%arg0: i32, %arg1: i32) -> (i32, i32) {
    %c0_i32 = arith.constant 0 : i32
    %c0_i32_0 = arith.constant 0 : i32
    return %arg0, %c0_i32 : i32, i32
  }
}

</mosaic_0001>

<bundles_post_ra>
// kernel: tpu_custom_call.1
= control target key start
LH: loop header
LB: loop body
LE: loop exit
PB: predicated region body
PF: predicated region fallthrough
CT: control target
= control target key end

     0   :  { %12 = vsyncpa [#allocation11], 0  ;;  %s4133_s0 = inlined_call_operand.hbm [shape: bf16[8,8,128], index: 0, kind: input, shape index: {}]   ;;  %s4134_s1 = inlined_call_operand.hbm [shape: bf16[128,128], index: 1, kind: input, shape index: {}]   ;;  %s4135_s2 = inlined_call_operand.hbm [shape: bf16[1,128,128], index: 2, kind: input, shape index: {}]   ;;  %s4136_s3 = inlined_call_operand.hbm [shape: bf16[2,128,128], index: 3, kind: input, shape index: {}]   ;;  %s4137_s4 = inlined_call_operand.vmem [shape: f32[2,1,128], index: 4, kind: input, shape index: {}]   ;;  %s4138_s5 = inlined_call_operand.hbm [shape: bf16[128,128], index: 5, kind: input, shape index: {}]   ;;  %s4139_s6 = inlined_call_operand.vmem [shape: f32[1,128], index: 6, kind: input, shape index: {}]   ;;  %s4140_s7 = inlined_call_operand.hbm [shape: f32[8,128], index: 7, kind: output, shape index: {}]  }
   0x1   :  { %13 = vsyncpa [#allocation12], 0  ;;  %s3266_s24 = smov [#allocation10]   ;;  %s3118_s28 = scalar_lea.hbm %s4133_s0, 512 }
   0x2   :  { %s19_s25 = sshll.u32 %s3266_s24, 4  ;;  %p3119_p0 = scmp.ne.s32.totalorder %s4133_s0, %s3118_s28  ;;  %s20_s25 = int_to_ptr.vmem [resolvable:$true] %s19_s25 }
   0x3   :  { %p3122_p1 = scmp.lt.u32.totalorder %s3118_s28, %s4133_s0 }
   0x5   :  { %p3124_p2 = pnand %p3122_p1, %p3119_p0 }
   0x7   :  { %3127 = shalt.err (!%p3124_p2)
}
   0x8   :  { %s3128_s10 = scalar_lea.vmem %s20_s25, 512  ;;  %p3133_p4 = scmp.lt.s32.totalorder %s20_s25, %s20_s25 }
   0x9   :  { %p3129_p3 = scmp.ne.s32.totalorder %s20_s25, %s3128_s10  ;;  %p3134_p5 = scmp.lt.s32.totalorder %s3128_s10, %s3128_s10 }
   0xb   :  { %p3135_p6 = por %p3134_p5, %p3133_p4 }
   0xd   :  { %p3136_p7 = pnand %p3135_p6, %p3129_p3 }
   0xf   :  { %3139 = shalt.err (!%p3136_p7)
}
  0x10   :  { %s3267_s11 = smov 64   ;;  %s3268_s12 = smov 4  }
  0x11   :  { %25 = dma.hbm_to_vmem [thread:$0]  %s4133_s0, 512, %s20_s25, [#allocation11], %s3267_s11, %s3267_s11, %s3268_s12  }
  0x12   :  { %3250 = dma.done.wait [#allocation11], 512  }
  0x13   :  { %3251 = vsyncadd [#allocation11], 4294966784  ;;  %s3269_s15 = smov [#allocation3]   ;;  %s3270_s17 = smov [#allocation5]  }
  0x14   :  { %s41_s16 = sshll.u32 %s3269_s15, 4  ;;  %s53_s18 = sshll.u32 %s3270_s17, 4  ;;  %s42_s16 = int_to_ptr.vmem [resolvable:$true] %s41_s16  ;;  %s54_s18 = int_to_ptr.vmem [resolvable:$true] %s53_s18 }
  0x15   :  { %s3140_s21 = scalar_lea.hbm %s4134_s1, 1024 }
  0x16   :  { %p3141_p8 = scmp.ne.s32.totalorder %s4134_s1, %s3140_s21  ;;  %p3144_p9 = scmp.lt.u32.totalorder %s3140_s21, %s4134_s1 }
  0x18   :  { %p3146_p10 = pnand %p3144_p9, %p3141_p8 }
  0x1a   :  { %3149 = shalt.err (!%p3146_p10)  }
  0x1b   :  { %s3150_s0 = scalar_lea.vmem %s42_s16, 1024  ;;  %p3155_p12 = scmp.lt.s32.totalorder %s42_s16, %s42_s16 }
  0x1c   :  { %p3151_p11 = scmp.ne.s32.totalorder %s42_s16, %s3150_s0  ;;  %p3156_p13 = scmp.lt.s32.totalorder %s3150_s0, %s3150_s0 }
  0x1e   :  { %p3157_p0 = por %p3156_p13, %p3155_p12 }
  0x20   :  { %p3158_p1 = pnand %p3157_p0, %p3151_p11 }
  0x22   :  { %3161 = shalt.err (!%p3158_p1)  }
  0x23   :  { %44 = dma.hbm_to_vmem [thread:$0]  %s4134_s1, 1024, %s42_s16, [#allocation9] }
  0x24   :  { %s3162_s30 = scalar_lea.hbm %s4136_s3, 2048 }
  0x25   :  { %p3163_p2 = scmp.ne.s32.totalorder %s4136_s3, %s3162_s30  ;;  %p3166_p3 = scmp.lt.u32.totalorder %s3162_s30, %s4136_s3 }
  0x27   :  { %p3168_p4 = pnand %p3166_p3, %p3163_p2 }
  0x29   :  { %3171 = shalt.err (!%p3168_p4)  }
  0x2a   :  { %s3172_s12 = scalar_lea.vmem %s54_s18, 2048  ;;  %p3177_p6 = scmp.lt.s32.totalorder %s54_s18, %s54_s18 }
  0x2b   :  { %p3173_p5 = scmp.ne.s32.totalorder %s54_s18, %s3172_s12  ;;  %p3178_p7 = scmp.lt.s32.totalorder %s3172_s12, %s3172_s12 }
  0x2d   :  { %p3179_p8 = por %p3178_p7, %p3177_p6 }
  0x2f   :  { %p3180_p9 = pnand %p3179_p8, %p3173_p5 }
  0x31   :  { %3183 = shalt.err (!%p3180_p9)  }
  0x32   :  { %56 = dma.hbm_to_vmem [thread:$0]  %s4136_s3, 2048, %s54_s18, [#allocation9 + $0x2]  ;;  %v75_v0 = vld [vmem:[%s4137_s4] sm:$0x3] }
  0x33   :  { %76 = vst [vmem:[#allocation6] sm:$0x3] %v75_v0 }
  0x34   :  { %101 = vsyncadd [#allocation9 + $0x3], 32  ;;  %v144_v1 = vld [vmem:[%s4139_s6] sm:$0x1]  ;;  %s3271_s19 = smov [#allocation4]   ;;  %s3272_s21 = smov [#allocation7]  }
  0x35   :  { %s110_s20 = sshll.u32 %s3271_s19, 4  ;;  %s122_s22 = sshll.u32 %s3272_s21, 4  ;;  %145 = vst [vmem:[#allocation8] sm:$0x1] %v144_v1  ;;  %s111_s20 = int_to_ptr.vmem [resolvable:$true] %s110_s20  ;;  %s123_s22 = int_to_ptr.vmem [resolvable:$true] %s122_s22 }
  0x36   :  { %s3184_s3 = scalar_lea.hbm %s4135_s2, 1024 }
  0x37   :  { %p3185_p10 = scmp.ne.s32.totalorder %s4135_s2, %s3184_s3  ;;  %p3188_p11 = scmp.lt.u32.totalorder %s3184_s3, %s4135_s2 }
  0x39   :  { %p3190_p12 = pnand %p3188_p11, %p3185_p10 }
  0x3b   :  { %3193 = shalt.err (!%p3190_p12)  }
  0x3c   :  { %s3194_s6 = scalar_lea.vmem %s111_s20, 1024  ;;  %p3199_p0 = scmp.lt.s32.totalorder %s111_s20, %s111_s20 }
  0x3d   :  { %p3195_p13 = scmp.ne.s32.totalorder %s111_s20, %s3194_s6  ;;  %p3200_p1 = scmp.lt.s32.totalorder %s3194_s6, %s3194_s6 }
  0x3f   :  { %p3201_p2 = por %p3200_p1, %p3199_p0 }
  0x41   :  { %p3202_p3 = pnand %p3201_p2, %p3195_p13 }
  0x43   :  { %3205 = shalt.err (!%p3202_p3)  }
  0x44   :  { %113 = dma.hbm_to_vmem [thread:$0]  %s4135_s2, 1024, %s111_s20, [#allocation9 + $0x1] }
  0x45   :  { %s3206_s30 = scalar_lea.hbm %s4138_s5, 1024 }
  0x46   :  { %p3207_p4 = scmp.ne.s32.totalorder %s4138_s5, %s3206_s30  ;;  %p3210_p5 = scmp.lt.u32.totalorder %s3206_s30, %s4138_s5 }
  0x48   :  { %p3212_p6 = pnand %p3210_p5, %p3207_p4 }
  0x4a   :  { %3215 = shalt.err (!%p3212_p6)  }
  0x4b   :  { %s3216_s12 = scalar_lea.vmem %s123_s22, 1024  ;;  %p3221_p8 = scmp.lt.s32.totalorder %s123_s22, %s123_s22 }
  0x4c   :  { %p3217_p7 = scmp.ne.s32.totalorder %s123_s22, %s3216_s12  ;;  %p3222_p9 = scmp.lt.s32.totalorder %s3216_s12, %s3216_s12 }
  0x4e   :  { %p3223_p10 = por %p3222_p9, %p3221_p8 }
  0x50   :  { %p3224_p11 = pnand %p3223_p10, %p3217_p7 }
  0x52   :  { %3227 = shalt.err (!%p3224_p11)  }
  0x53   :  { %125 = dma.hbm_to_vmem [thread:$0]  %s4138_s5, 1024, %s123_s22, [#allocation9 + $0x4] }
  0x54   :  { %170 = vsyncadd [#allocation9 + $0x5], 16 }
  0x55   :  { %3252 = dma.done.wait [#allocation9], 1024 }
  0x56   :  { %3253 = vsyncadd [#allocation9], 4294966272 }
  0x57   :  { %3254 = dma.done.wait [#allocation9 + $0x2], 2048 }
  0x58   :  { %3255 = vsyncadd [#allocation9 + $0x2], 4294965248 }
  0x59   :  { %3256 = dma.done.wait [#allocation9 + $0x3], 32 }
  0x5a   :  { %3257 = vsyncadd [#allocation9 + $0x3], 4294967264 }
  0x5b   :  { %3258 = dma.done.wait [#allocation9 + $0x1], 1024 }
  0x5c   :  { %3259 = vsyncadd [#allocation9 + $0x1], 4294966272  ;;  %v3273_v2 = vmov 0.0   ;;  %v3274_v3 = vmov 0   ;;  %vm3275_vm0 = vmmov 0   ;;  %v3389_v4 = vld [vmem:[#allocation5] sm:$0xff] }
  0x5d   :  { %2411 = vmatprep.subr.bf16.mxu0 %v3273_v2  ;;  %2431 = vmatprep.subr.bf16.mxu1 %v3273_v2  ;;  %189 = vst [vmem:[#allocation2] sm:$0xf] %v3274_v3  ;;  %190 = vst [vmem:[#allocation2 + $0x4] sm:$0xf] %v3274_v3  ;;  %v3391_v5 = vld [vmem:[#allocation3] sm:$0xff]  ;;  %v3397_v6 = vld [vmem:[#allocation5 + $0x8] sm:$0xff] }
  0x5e   :  { %2427 = vmatprep.mubr.msk.bf16.mxu0 %vm3275_vm0, %v3273_v2  ;;  %2447 = vmatprep.mubr.msk.bf16.mxu1 %vm3275_vm0, %v3273_v2  ;;  %v3399_v7 = vld [vmem:[#allocation3 + $0x8] sm:$0xff]  ;;  %v3405_v8 = vld [vmem:[#allocation5 + $0x10] sm:$0xff]  ;;  %v3413_v10 = vld [vmem:[#allocation5 + $0x18] sm:$0xff] }
  0x5f   :  { %2412 = vmatpush3.bf16.msra.mxu0 %v3389_v4  ;;  %2432 = vmatpush3.bf16.msra.mxu1 %v3391_v5  ;;  %v3407_v9 = vld [vmem:[#allocation3 + $0x10] sm:$0xff]  ;;  %v3415_v11 = vld [vmem:[#allocation3 + $0x18] sm:$0xff]  ;;  %v3421_v12 = vld [vmem:[#allocation5 + $0x20] sm:$0xff] }
  0x60   :  { %2413 = vmatprep.subr.bf16.mxu0 %v3273_v2  ;;  %2433 = vmatprep.subr.bf16.mxu1 %v3273_v2  ;;  %v3423_v13 = vld [vmem:[#allocation3 + $0x20] sm:$0xff]  ;;  %v3429_v14 = vld [vmem:[#allocation5 + $0x28] sm:$0xff]  ;;  %v3437_v16 = vld [vmem:[#allocation5 + $0x30] sm:$0xff] }
  0x61   :  { %v3431_v15 = vld [vmem:[#allocation3 + $0x28] sm:$0xff]  ;;  %v3439_v17 = vld [vmem:[#allocation3 + $0x30] sm:$0xff]  ;;  %v3445_v18 = vld [vmem:[#allocation5 + $0x38] sm:$0xff] }
  0x62   :  { %v3447_v19 = vld [vmem:[#allocation3 + $0x38] sm:$0xff]  ;;  %v191_v21 = vld [vmem:[#allocation10] sm:$0xf]  ;;  %v3460_v24 = vld [vmem:[#allocation5 + $0x48] sm:$0xff] }
  0x63   :  { %2414 = vmatpush3.bf16.msra.mxu0 %v3397_v6  ;;  %2434 = vmatpush3.bf16.msra.mxu1 %v3399_v7  ;;  %v3452_v22 = vld [vmem:[#allocation5 + $0x40] sm:$0xff]  ;;  %v3463_v25 = vld [vmem:[#allocation4 + $0x8] sm:$0xff]  ;;  %v3472_v26 = vld [vmem:[#allocation5 + $0x50] sm:$0xff] }
  0x64   :  { %2415 = vmatprep.subr.bf16.mxu0 %v3273_v2  ;;  %2435 = vmatprep.subr.bf16.mxu1 %v3273_v2  ;;  %v200_v20 = vld [vmem:[#allocation2] sm:$0xf]  ;;  %v3455_v23 = vld [vmem:[#allocation4] sm:$0xff]  ;;  %v3475_v27 = vld [vmem:[#allocation4 + $0x10] sm:$0xff] }
  0x65   :  { %v3480_v28 = vld [vmem:[#allocation5 + $0x58] sm:$0xff]  ;;  %v3488_v30 = vld [vmem:[#allocation5 + $0x60] sm:$0xff]  ;;  %v3493_v31 = vld [vmem:[#allocation5 + $0x68] sm:$0xff] }
  0x66   :  { %v3483_v29 = vld [vmem:[#allocation4 + $0x18] sm:$0xff]  ;;  %v3497_v32 = vld [vmem:[#allocation5 + $0x70] sm:$0xff]  ;;  %v3523_v35 = vld [vmem:[#allocation4 + $0x20] sm:$0xff] }
  0x67   :  { %2416 = vmatpush3.bf16.msra.mxu0 %v3405_v8  ;;  %2436 = vmatpush3.bf16.msra.mxu1 %v3407_v9  ;;  %v3501_v33 = vld [vmem:[#allocation5 + $0x78] sm:$0xff]  ;;  %v3527_v36 = vld [vmem:[#allocation4 + $0x28] sm:$0xff]  ;;  %v3531_v37 = vld [vmem:[#allocation4 + $0x30] sm:$0xff] }
  0x68   :  { %2417 = vmatprep.subr.bf16.mxu0 %v3273_v2  ;;  %2437 = vmatprep.subr.bf16.mxu1 %v3273_v2  ;;  %v309_v34 = vld [vmem:[#allocation2 + $0x4] sm:$0xf]  ;;  %v3539_v41 = vld [vmem:[#allocation6] ss:$0 sm:$0xff]  ;;  %v412_v57 = vld [vmem:[#allocation10 + $0x4] sm:$0xf] }
  0x69   :  { %v3535_v38 = vld [vmem:[#allocation4 + $0x38] sm:$0xff]  ;;  %v3596_v59 = vld [vmem:[#allocation6 + $0x1] ss:$0 sm:$0xff] }
  0x6b   :  { %2418 = vmatpush3.bf16.msra.mxu0 %v3413_v10  ;;  %2438 = vmatpush3.bf16.msra.mxu1 %v3415_v11 }
  0x6c   :  { %2419 = vmatprep.subr.bf16.mxu0 %v3273_v2  ;;  %2439 = vmatprep.subr.bf16.mxu1 %v3273_v2 }
  0x6f   :  { %2420 = vmatpush3.bf16.msra.mxu0 %v3421_v12  ;;  %2440 = vmatpush3.bf16.msra.mxu1 %v3423_v13 }
  0x70   :  { %2421 = vmatprep.subr.bf16.mxu0 %v3273_v2  ;;  %2441 = vmatprep.subr.bf16.mxu1 %v3273_v2 }
  0x73   :  { %2422 = vmatpush3.bf16.msra.mxu0 %v3429_v14  ;;  %2442 = vmatpush3.bf16.msra.mxu1 %v3431_v15 }
  0x74   :  { %2423 = vmatprep.subr.bf16.mxu0 %v3273_v2  ;;  %2443 = vmatprep.subr.bf16.mxu1 %v3273_v2 }
  0x77   :  { %2424 = vmatpush3.bf16.msra.mxu0 %v3437_v16  ;;  %2444 = vmatpush3.bf16.msra.mxu1 %v3439_v17 }
  0x78   :  { %2425 = vmatprep.subr.bf16.mxu0 %v3273_v2  ;;  %2445 = vmatprep.subr.bf16.mxu1 %v3273_v2 }
  0x7b   :  { %2426 = vmatpush3.bf16.msra.mxu0 %v3445_v18  ;;  %2446 = vmatpush3.bf16.msra.mxu1 %v3447_v19 }
  0x7c   :  { %2451 = vmatprep.subr.bf16.mxu0 %v3273_v2  ;;  %2471 = vmatprep.subr.bf16.mxu1 %v3273_v2 }
  0x7e   :  { %2428 = vmatmul.mubr.bf16.vlgmr.msra.gmra.mrb[0].mxu0 %v200_v20  ;;  %2448 = vmatmul.mubr.bf16.vlgmr.msra.gmra.mrb[0].mxu1 %v191_v21 }
  0x7f   :  { %2452 = vmatpush3.bf16.msra.mxu0 %v3452_v22  ;;  %2472 = vmatpush3.bf16.msra.mxu1 %v3455_v23 }
  0x80   :  { %2453 = vmatprep.subr.bf16.mxu0 %v3273_v2  ;;  %2473 = vmatprep.subr.bf16.mxu1 %v3273_v2 }
  0x81   :  { %2467 = vmatprep.mubr.msk.bf16.mxu0 %vm3275_vm0, %v3273_v2  ;;  %2487 = vmatprep.mubr.msk.bf16.mxu1 %vm3275_vm0, %v3273_v2 }
  0x83   :  { %2454 = vmatpush3.bf16.msra.mxu0 %v3460_v24  ;;  %2474 = vmatpush3.bf16.msra.mxu1 %v3463_v25 }
  0x84   :  { %2455 = vmatprep.subr.bf16.mxu0 %v3273_v2  ;;  %2475 = vmatprep.subr.bf16.mxu1 %v3273_v2 }
  0x87   :  { %2456 = vmatpush3.bf16.msra.mxu0 %v3472_v26  ;;  %2476 = vmatpush3.bf16.msra.mxu1 %v3475_v27 }
  0x88   :  { %2457 = vmatprep.subr.bf16.mxu0 %v3273_v2  ;;  %2477 = vmatprep.subr.bf16.mxu1 %v3273_v2 }
  0x8b   :  { %2458 = vmatpush3.bf16.msra.mxu0 %v3480_v28  ;;  %2478 = vmatpush3.bf16.msra.mxu1 %v3483_v29 }
  0x8c   :  { %2459 = vmatprep.subr.bf16.mxu0 %v3273_v2  ;;  %2479 = vmatprep.subr.bf16.mxu1 %v3273_v2 }
  0x8f   :  { %2460 = vmatpush3.bf16.msra.mxu0 %v3488_v30  ;;  %2480 = vmatpush3.bf16.msra.mxu1 %v3523_v35 }
  0x90   :  { %2461 = vmatprep.subr.bf16.mxu0 %v3273_v2  ;;  %2481 = vmatprep.subr.bf16.mxu1 %v3273_v2 }
  0x93   :  { %2462 = vmatpush3.bf16.msra.mxu0 %v3493_v31  ;;  %2482 = vmatpush3.bf16.msra.mxu1 %v3527_v36 }
  0x94   :  { %2463 = vmatprep.subr.bf16.mxu0 %v3273_v2  ;;  %2483 = vmatprep.subr.bf16.mxu1 %v3273_v2 }
  0x97   :  { %2464 = vmatpush3.bf16.msra.mxu0 %v3497_v32  ;;  %2484 = vmatpush3.bf16.msra.mxu1 %v3531_v37 }
  0x98   :  { %2465 = vmatprep.subr.bf16.mxu0 %v3273_v2  ;;  %2485 = vmatprep.subr.bf16.mxu1 %v3273_v2 }
  0x9b   :  { %2466 = vmatpush3.bf16.msra.mxu0 %v3501_v33  ;;  %2486 = vmatpush3.bf16.msra.mxu1 %v3535_v38 }
  0x9c   :  { %2491 = vmatprep.subr.bf16.mxu0 %v3273_v2  ;;  %2511 = vmatprep.subr.bf16.mxu1 %v3273_v2 }
  0x9e   :  { %2468 = vmatmul.mubr.bf16.vlgmr.msra.gmra.mrb[4].mxu0 %v309_v34 }
  0x9f   :  { %2492 = vmatpush3.bf16.msra.mxu0 %v3389_v4  ;;  %2507 = vmatprep.mubr.msk.bf16.mxu0 %vm3275_vm0, %v3273_v2 }
  0xa0   :  { %2493 = vmatprep.subr.bf16.mxu0 %v3273_v2 }
  0xa3   :  { %2494 = vmatpush3.bf16.msra.mxu0 %v3397_v6 }
  0xa4   :  { %2495 = vmatprep.subr.bf16.mxu0 %v3273_v2 }
  0xa7   :  { %2496 = vmatpush3.bf16.msra.mxu0 %v3405_v8 }
  0xa8   :  { %2497 = vmatprep.subr.bf16.mxu0 %v3273_v2 }
  0xab   :  { %2498 = vmatpush3.bf16.msra.mxu0 %v3413_v10 }
  0xac   :  { %2499 = vmatprep.subr.bf16.mxu0 %v3273_v2 }
  0xaf   :  { %2500 = vmatpush3.bf16.msra.mxu0 %v3421_v12 }
  0xb0   :  { %2501 = vmatprep.subr.bf16.mxu0 %v3273_v2 }
  0xb3   :  { %2502 = vmatpush3.bf16.msra.mxu0 %v3429_v14 }
  0xb4   :  { %2503 = vmatprep.subr.bf16.mxu0 %v3273_v2 }
  0xb7   :  { %2504 = vmatpush3.bf16.msra.mxu0 %v3437_v16 }
  0xb8   :  { %2505 = vmatprep.subr.bf16.mxu0 %v3273_v2 }
  0xbb   :  { %2506 = vmatpush3.bf16.msra.mxu0 %v3445_v18 }
  0xbc   :  { %2531 = vmatprep.subr.bf16.mxu0 %v3273_v2 }
 0x151   :  { %v243_v39 = vpop.f32.mrb[0].mxu0  ;;  %v283_v40 = vpop.f32.mrb[0].mxu1 }
 0x152   :  { %v284_v42 = vadd.f32 %v283_v40, %v243_v39  ;;  %v2429_v43 = vpop.f32.mrb[1].mxu0  ;;  %v2449_v44 = vpop.f32.mrb[1].mxu1 }
 0x153   :  { %v246_v45 = vpop.f32.mrb[2].mxu0  ;;  %v286_v46 = vpop.f32.mrb[2].mxu1 }
 0x154   :  { %v296_v47 = vadd.f32 %v3539_v41, %v284_v42  ;;  %v2430_v48 = vpop.f32.mrb[3].mxu0  ;;  %v2450_v49 = vpop.f32.mrb[3].mxu1 }
 0x156   :  { %3082 = vtanh.f32 %v296_v47 }
 0x160   :  { %v3083_v50 = vpop.eup %3082 }
 0x161   :  { %v298_v51 = vpack.c.bf16 %v3083_v50, %v3083_v50 }
 0x163   :  { %299 = vst [vmem:[#allocation2] sm:$0xf] %v298_v51  ;;  %2488 = vmatmul.mubr.bf16.vlgmr.msra.gmra.mrb[4].mxu1 %v298_v51  ;;  %v630_v51 = vld [vmem:[#allocation10 + $0x8] sm:$0xf] }
 0x164   :  { %2512 = vmatpush3.bf16.msra.mxu1 %v3391_v5  ;;  %2527 = vmatprep.mubr.msk.bf16.mxu1 %vm3275_vm0, %v3273_v2 }
 0x165   :  { %2513 = vmatprep.subr.bf16.mxu1 %v3273_v2 }
 0x168   :  { %2514 = vmatpush3.bf16.msra.mxu1 %v3399_v7 }
 0x169   :  { %2515 = vmatprep.subr.bf16.mxu1 %v3273_v2 }
 0x16a   :  { %v421_v52 = vld [vmem:[#allocation2] sm:$0xf] }
 0x16b   :  { %2508 = vmatmul.mubr.bf16.vlgmr.msra.gmra.mrb[8].mxu0 %v421_v52 }
 0x16c   :  { %2516 = vmatpush3.bf16.msra.mxu1 %v3407_v9  ;;  %2532 = vmatpush3.bf16.msra.mxu0 %v3452_v22 }
 0x16d   :  { %2517 = vmatprep.subr.bf16.mxu1 %v3273_v2  ;;  %2533 = vmatprep.subr.bf16.mxu0 %v3273_v2 }
 0x16e   :  { %2547 = vmatprep.mubr.msk.bf16.mxu0 %vm3275_vm0, %v3273_v2 }
 0x170   :  { %2518 = vmatpush3.bf16.msra.mxu1 %v3415_v11  ;;  %2534 = vmatpush3.bf16.msra.mxu0 %v3460_v24 }
 0x171   :  { %2519 = vmatprep.subr.bf16.mxu1 %v3273_v2  ;;  %v353_v53 = vpop.f32.mrb[4].mxu0  ;;  %2535 = vmatprep.subr.bf16.mxu0 %v3273_v2 }
 0x172   :  { %v2469_v54 = vpop.f32.mrb[5].mxu0 }
 0x173   :  { %v356_v55 = vpop.f32.mrb[6].mxu0 }
 0x174   :  { %2520 = vmatpush3.bf16.msra.mxu1 %v3423_v13  ;;  %v2470_v56 = vpop.f32.mrb[7].mxu0  ;;  %2536 = vmatpush3.bf16.msra.mxu0 %v3472_v26 }
 0x175   :  { %2521 = vmatprep.subr.bf16.mxu1 %v3273_v2  ;;  %2537 = vmatprep.subr.bf16.mxu0 %v3273_v2 }
 0x178   :  { %2522 = vmatpush3.bf16.msra.mxu1 %v3431_v15  ;;  %2538 = vmatpush3.bf16.msra.mxu0 %v3480_v28 }
 0x179   :  { %2523 = vmatprep.subr.bf16.mxu1 %v3273_v2  ;;  %2539 = vmatprep.subr.bf16.mxu0 %v3273_v2 }
 0x17c   :  { %2524 = vmatpush3.bf16.msra.mxu1 %v3439_v17  ;;  %2540 = vmatpush3.bf16.msra.mxu0 %v3488_v30 }
 0x17d   :  { %2525 = vmatprep.subr.bf16.mxu1 %v3273_v2  ;;  %2541 = vmatprep.subr.bf16.mxu0 %v3273_v2 }
 0x180   :  { %2526 = vmatpush3.bf16.msra.mxu1 %v3447_v19  ;;  %2542 = vmatpush3.bf16.msra.mxu0 %v3493_v31 }
 0x181   :  { %2551 = vmatprep.subr.bf16.mxu1 %v3273_v2  ;;  %2543 = vmatprep.subr.bf16.mxu0 %v3273_v2 }
 0x183   :  { %2528 = vmatmul.mubr.bf16.vlgmr.msra.gmra.mrb[8].mxu1 %v412_v57 }
 0x184   :  { %2552 = vmatpush3.bf16.msra.mxu1 %v3455_v23  ;;  %2544 = vmatpush3.bf16.msra.mxu0 %v3497_v32 }
 0x185   :  { %2553 = vmatprep.subr.bf16.mxu1 %v3273_v2  ;;  %2545 = vmatprep.subr.bf16.mxu0 %v3273_v2 }
 0x186   :  { %2567 = vmatprep.mubr.msk.bf16.mxu1 %vm3275_vm0, %v3273_v2 }
 0x188   :  { %2554 = vmatpush3.bf16.msra.mxu1 %v3463_v25  ;;  %2546 = vmatpush3.bf16.msra.mxu0 %v3501_v33 }
 0x189   :  { %2555 = vmatprep.subr.bf16.mxu1 %v3273_v2  ;;  %2571 = vmatprep.subr.bf16.mxu0 %v3273_v2 }
 0x18c   :  { %2556 = vmatpush3.bf16.msra.mxu1 %v3475_v27 }
 0x18d   :  { %2557 = vmatprep.subr.bf16.mxu1 %v3273_v2 }
 0x190   :  { %2558 = vmatpush3.bf16.msra.mxu1 %v3483_v29 }
 0x191   :  { %2559 = vmatprep.subr.bf16.mxu1 %v3273_v2 }
 0x194   :  { %2560 = vmatpush3.bf16.msra.mxu1 %v3523_v35 }
 0x195   :  { %2561 = vmatprep.subr.bf16.mxu1 %v3273_v2 }
 0x198   :  { %2562 = vmatpush3.bf16.msra.mxu1 %v3527_v36 }
 0x199   :  { %2563 = vmatprep.subr.bf16.mxu1 %v3273_v2 }
 0x19c   :  { %2564 = vmatpush3.bf16.msra.mxu1 %v3531_v37 }
 0x19d   :  { %2565 = vmatprep.subr.bf16.mxu1 %v3273_v2 }
 0x1a0   :  { %2566 = vmatpush3.bf16.msra.mxu1 %v3535_v38 }
 0x1a1   :  { %2591 = vmatprep.subr.bf16.mxu1 %v3273_v2 }
 0x236   :  { %v393_v58 = vpop.f32.mrb[4].mxu1 }
 0x237   :  { %v394_v60 = vadd.f32 %v393_v58, %v353_v53  ;;  %v2489_v61 = vpop.f32.mrb[5].mxu1 }
 0x238   :  { %v396_v62 = vpop.f32.mrb[6].mxu1 }
 0x239   :  { %v407_v63 = vadd.f32 %v3596_v59, %v394_v60  ;;  %v2490_v0 = vpop.f32.mrb[7].mxu1 }
 0x23b   :  { %3084 = vtanh.f32 %v407_v63 }
 0x23e   :  { %v464_v1 = vpop.f32.mrb[8].mxu0 }
 0x23f   :  { %v2509_v3 = vpop.f32.mrb[9].mxu0 }
 0x240   :  { %v467_v20 = vpop.f32.mrb[10].mxu0 }
 0x241   :  { %v2510_v21 = vpop.f32.mrb[11].mxu0 }
 0x245   :  { %v3085_v34 = vpop.eup %3084 }
 0x246   :  { %v409_v39 = vpack.c.bf16 %v3085_v34, %v3085_v34 }
 0x248   :  { %410 = vst [vmem:[#allocation2 + $0x4] sm:$0xf] %v409_v39 }
 0x24f   :  { %v529_v40 = vld [vmem:[#allocation2 + $0x4] sm:$0xf] }
 0x250   :  { %2548 = vmatmul.mubr.bf16.vlgmr.msra.gmra.mrb[12].mxu0 %v529_v40 }
 0x251   :  { %2572 = vmatpush3.bf16.msra.mxu0 %v3389_v4  ;;  %2587 = vmatprep.mubr.msk.bf16.mxu0 %vm3275_vm0, %v3273_v2 }
 0x252   :  { %2573 = vmatprep.subr.bf16.mxu0 %v3273_v2 }
 0x255   :  { %2574 = vmatpush3.bf16.msra.mxu0 %v3397_v6 }
 0x256   :  { %v504_v42 = vpop.f32.mrb[8].mxu1  ;;  %2575 = vmatprep.subr.bf16.mxu0 %v3273_v2 }
 0x257   :  { %v505_v43 = vadd.f32 %v504_v42, %v464_v1  ;;  %v2529_v44 = vpop.f32.mrb[9].mxu1 }
 0x258   :  { %v507_v45 = vpop.f32.mrb[10].mxu1 }
 0x259   :  { %v517_v46 = vadd.f32 %v3539_v41, %v505_v43  ;;  %v2530_v47 = vpop.f32.mrb[11].mxu1  ;;  %2576 = vmatpush3.bf16.msra.mxu0 %v3405_v8 }
 0x25a   :  { %2577 = vmatprep.subr.bf16.mxu0 %v3273_v2 }
 0x25b   :  { %3086 = vtanh.f32 %v517_v46 }
 0x25d   :  { %2578 = vmatpush3.bf16.msra.mxu0 %v3413_v10 }
 0x25e   :  { %2579 = vmatprep.subr.bf16.mxu0 %v3273_v2 }
 0x261   :  { %2580 = vmatpush3.bf16.msra.mxu0 %v3421_v12 }
 0x262   :  { %2581 = vmatprep.subr.bf16.mxu0 %v3273_v2 }
 0x265   :  { %v3087_v48 = vpop.eup %3086  ;;  %2582 = vmatpush3.bf16.msra.mxu0 %v3429_v14 }
 0x266   :  { %v519_v49 = vpack.c.bf16 %v3087_v48, %v3087_v48  ;;  %2583 = vmatprep.subr.bf16.mxu0 %v3273_v2 }
 0x268   :  { %520 = vst [vmem:[#allocation2] sm:$0xf] %v519_v49  ;;  %2568 = vmatmul.mubr.bf16.vlgmr.msra.gmra.mrb[12].mxu1 %v519_v49  ;;  %v3790_v49 = vld [vmem:[#allocation3 + $0x20] sm:$0xff] }
 0x269   :  { %2592 = vmatpush3.bf16.msra.mxu1 %v3391_v5  ;;  %2584 = vmatpush3.bf16.msra.mxu0 %v3437_v16 }
 0x26a   :  { %2593 = vmatprep.subr.bf16.mxu1 %v3273_v2  ;;  %2585 = vmatprep.subr.bf16.mxu0 %v3273_v2 }
 0x26b   :  { %2607 = vmatprep.mubr.msk.bf16.mxu1 %vm3275_vm0, %v3273_v2 }
 0x26d   :  { %2594 = vmatpush3.bf16.msra.mxu1 %v3399_v7  ;;  %2586 = vmatpush3.bf16.msra.mxu0 %v3445_v18 }
 0x26e   :  { %2595 = vmatprep.subr.bf16.mxu1 %v3273_v2  ;;  %2611 = vmatprep.subr.bf16.mxu0 %v3273_v2 }
 0x26f   :  { %v639_v50 = vld [vmem:[#allocation2] sm:$0xf] }
 0x270   :  { %2588 = vmatmul.mubr.bf16.vlgmr.msra.gmra.mrb[16].mxu0 %v639_v50  ;;  %v3794_v50 = vld [vmem:[#allocation3 + $0x28] sm:$0xff] }
 0x271   :  { %2596 = vmatpush3.bf16.msra.mxu1 %v3407_v9  ;;  %2612 = vmatpush3.bf16.msra.mxu0 %v3452_v22 }
 0x272   :  { %2597 = vmatprep.subr.bf16.mxu1 %v3273_v2  ;;  %2613 = vmatprep.subr.bf16.mxu0 %v3273_v2 }
 0x273   :  { %2627 = vmatprep.mubr.msk.bf16.mxu0 %vm3275_vm0, %v3273_v2 }
 0x275   :  { %2598 = vmatpush3.bf16.msra.mxu1 %v3415_v11  ;;  %2614 = vmatpush3.bf16.msra.mxu0 %v3460_v24 }
 0x276   :  { %2599 = vmatprep.subr.bf16.mxu1 %v3273_v2  ;;  %2615 = vmatprep.subr.bf16.mxu0 %v3273_v2 }
 0x279   :  { %2600 = vmatpush3.bf16.msra.mxu1 %v3423_v13  ;;  %2616 = vmatpush3.bf16.msra.mxu0 %v3472_v26 }
 0x27a   :  { %2601 = vmatprep.subr.bf16.mxu1 %v3273_v2  ;;  %2617 = vmatprep.subr.bf16.mxu0 %v3273_v2 }
 0x27d   :  { %2602 = vmatpush3.bf16.msra.mxu1 %v3431_v15  ;;  %2618 = vmatpush3.bf16.msra.mxu0 %v3480_v28 }
 0x27e   :  { %2603 = vmatprep.subr.bf16.mxu1 %v3273_v2  ;;  %2619 = vmatprep.subr.bf16.mxu0 %v3273_v2 }
 0x281   :  { %2604 = vmatpush3.bf16.msra.mxu1 %v3439_v17  ;;  %2620 = vmatpush3.bf16.msra.mxu0 %v3488_v30 }
 0x282   :  { %2605 = vmatprep.subr.bf16.mxu1 %v3273_v2  ;;  %2621 = vmatprep.subr.bf16.mxu0 %v3273_v2 }
 0x285   :  { %2606 = vmatpush3.bf16.msra.mxu1 %v3447_v19  ;;  %2622 = vmatpush3.bf16.msra.mxu0 %v3493_v31 }
 0x286   :  { %2631 = vmatprep.subr.bf16.mxu1 %v3273_v2  ;;  %2623 = vmatprep.subr.bf16.mxu0 %v3273_v2 }
 0x288   :  { %2608 = vmatmul.mubr.bf16.vlgmr.msra.gmra.mrb[16].mxu1 %v630_v51  ;;  %v3798_v51 = vld [vmem:[#allocation3 + $0x30] sm:$0xff] }
 0x289   :  { %2632 = vmatpush3.bf16.msra.mxu1 %v3455_v23  ;;  %2624 = vmatpush3.bf16.msra.mxu0 %v3497_v32 }
 0x28a   :  { %2633 = vmatprep.subr.bf16.mxu1 %v3273_v2  ;;  %2625 = vmatprep.subr.bf16.mxu0 %v3273_v2 }
 0x28b   :  { %2647 = vmatprep.mubr.msk.bf16.mxu1 %vm3275_vm0, %v3273_v2 }
 0x28d   :  { %2634 = vmatpush3.bf16.msra.mxu1 %v3463_v25  ;;  %2626 = vmatpush3.bf16.msra.mxu0 %v3501_v33 }
 0x28e   :  { %2635 = vmatprep.subr.bf16.mxu1 %v3273_v2  ;;  %2651 = vmatprep.subr.bf16.mxu0 %v3273_v2 }
 0x291   :  { %2636 = vmatpush3.bf16.msra.mxu1 %v3475_v27 }
 0x292   :  { %2637 = vmatprep.subr.bf16.mxu1 %v3273_v2 }
 0x295   :  { %2638 = vmatpush3.bf16.msra.mxu1 %v3483_v29 }
 0x296   :  { %2639 = vmatprep.subr.bf16.mxu1 %v3273_v2 }
 0x299   :  { %2640 = vmatpush3.bf16.msra.mxu1 %v3523_v35 }
 0x29a   :  { %2641 = vmatprep.subr.bf16.mxu1 %v3273_v2 }
 0x29d   :  { %2642 = vmatpush3.bf16.msra.mxu1 %v3527_v36 }
 0x29e   :  { %2643 = vmatprep.subr.bf16.mxu1 %v3273_v2 }
 0x2a1   :  { %2644 = vmatpush3.bf16.msra.mxu1 %v3531_v37 }
 0x2a2   :  { %2645 = vmatprep.subr.bf16.mxu1 %v3273_v2 }
 0x2a5   :  { %2646 = vmatpush3.bf16.msra.mxu1 %v3535_v38 }
 0x2a6   :  { %2671 = vmatprep.subr.bf16.mxu1 %v3273_v2 }
 0x323   :  { %v572_v52 = vpop.f32.mrb[12].mxu0 }
 0x324   :  { %v2549_v53 = vpop.f32.mrb[13].mxu0 }
 0x325   :  { %v575_v54 = vpop.f32.mrb[14].mxu0  ;;  %v1066_v53 = vld [vmem:[#allocation10 + $0x10] sm:$0xf] }
 0x326   :  { %v2550_v55 = vpop.f32.mrb[15].mxu0  ;;  %v3808_v54 = vld [vmem:[#allocation5 + $0x40] sm:$0xff] }
 0x327   :  { %v3812_v55 = vld [vmem:[#allocation5 + $0x48] sm:$0xff] }
 0x33b   :  { %v612_v56 = vpop.f32.mrb[12].mxu1 }
 0x33c   :  { %v613_v57 = vadd.f32 %v612_v56, %v572_v52  ;;  %v2569_v58 = vpop.f32.mrb[13].mxu1  ;;  %v3802_v52 = vld [vmem:[#allocation3 + $0x38] sm:$0xff]  ;;  %v3816_v56 = vld [vmem:[#allocation5 + $0x50] sm:$0xff] }
 0x33d   :  { %v615_v60 = vpop.f32.mrb[14].mxu1  ;;  %v3824_v58 = vld [vmem:[#allocation5 + $0x60] sm:$0xff] }
 0x33e   :  { %v625_v61 = vadd.f32 %v3596_v59, %v613_v57  ;;  %v2570_v62 = vpop.f32.mrb[15].mxu1  ;;  %v3820_v57 = vld [vmem:[#allocation5 + $0x58] sm:$0xff]  ;;  %v3828_v60 = vld [vmem:[#allocation5 + $0x68] sm:$0xff] }
 0x33f   :  { %v3835_v62 = vld [vmem:[#allocation5 + $0x70] sm:$0xff] }
 0x340   :  { %3088 = vtanh.f32 %v625_v61  ;;  %v3832_v61 = vld [vmem:[#allocation4] sm:$0xff] }
 0x343   :  { %v682_v63 = vpop.f32.mrb[16].mxu0 }
 0x344   :  { %v2589_v0 = vpop.f32.mrb[17].mxu0 }
 0x345   :  { %v685_v1 = vpop.f32.mrb[18].mxu0  ;;  %v3842_v0 = vld [vmem:[#allocation5 + $0x78] sm:$0xff] }
 0x346   :  { %v2590_v3 = vpop.f32.mrb[19].mxu0  ;;  %v3847_v1 = vld [vmem:[#allocation4 + $0x10] sm:$0xff] }
 0x347   :  { %v3852_v3 = vld [vmem:[#allocation4 + $0x18] sm:$0xff] }
 0x34a   :  { %v3089_v20 = vpop.eup %3088 }
 0x34b   :  { %v627_v21 = vpack.c.bf16 %v3089_v20, %v3089_v20  ;;  %v3856_v20 = vld [vmem:[#allocation4 + $0x20] sm:$0xff] }
 0x34d   :  { %628 = vst [vmem:[#allocation2 + $0x4] sm:$0xf] %v627_v21  ;;  %v3860_v21 = vld [vmem:[#allocation4 + $0x28] sm:$0xff] }
 0x354   :  { %v747_v34 = vld [vmem:[#allocation2 + $0x4] sm:$0xf] }
 0x355   :  { %2628 = vmatmul.mubr.bf16.vlgmr.msra.gmra.mrb[20].mxu0 %v747_v34  ;;  %v3864_v34 = vld [vmem:[#allocation4 + $0x30] sm:$0xff] }
 0x356   :  { %2652 = vmatpush3.bf16.msra.mxu0 %v3389_v4  ;;  %2667 = vmatprep.mubr.msk.bf16.mxu0 %vm3275_vm0, %v3273_v2 }
 0x357   :  { %2653 = vmatprep.subr.bf16.mxu0 %v3273_v2 }
 0x35a   :  { %2654 = vmatpush3.bf16.msra.mxu0 %v3397_v6 }
 0x35b   :  { %v722_v39 = vpop.f32.mrb[16].mxu1  ;;  %2655 = vmatprep.subr.bf16.mxu0 %v3273_v2 }
 0x35c   :  { %v723_v40 = vadd.f32 %v722_v39, %v682_v63  ;;  %v2609_v42 = vpop.f32.mrb[17].mxu1  ;;  %v3839_v63 = vld [vmem:[#allocation4 + $0x8] sm:$0xff]  ;;  %v3868_v39 = vld [vmem:[#allocation4 + $0x38] sm:$0xff] }
 0x35d   :  { %v725_v43 = vpop.f32.mrb[18].mxu1 }
 0x35e   :  { %v735_v44 = vadd.f32 %v3539_v41, %v723_v40  ;;  %v2610_v45 = vpop.f32.mrb[19].mxu1  ;;  %2656 = vmatpush3.bf16.msra.mxu0 %v3405_v8 }
 0x35f   :  { %2657 = vmatprep.subr.bf16.mxu0 %v3273_v2 }
 0x360   :  { %3090 = vtanh.f32 %v735_v44 }
 0x362   :  { %2658 = vmatpush3.bf16.msra.mxu0 %v3413_v10 }
 0x363   :  { %2659 = vmatprep.subr.bf16.mxu0 %v3273_v2 }
 0x366   :  { %2660 = vmatpush3.bf16.msra.mxu0 %v3421_v12 }
 0x367   :  { %2661 = vmatprep.subr.bf16.mxu0 %v3273_v2 }
 0x36a   :  { %v3091_v46 = vpop.eup %3090  ;;  %2662 = vmatpush3.bf16.msra.mxu0 %v3429_v14 }
 0x36b   :  { %v737_v47 = vpack.c.bf16 %v3091_v46, %v3091_v46  ;;  %2663 = vmatprep.subr.bf16.mxu0 %v3273_v2 }
 0x36d   :  { %738 = vst [vmem:[#allocation2] sm:$0xf] %v737_v47  ;;  %2648 = vmatmul.mubr.bf16.vlgmr.msra.gmra.mrb[20].mxu1 %v737_v47 }
 0x36e   :  { %2672 = vmatpush3.bf16.msra.mxu1 %v3391_v5  ;;  %2664 = vmatpush3.bf16.msra.mxu0 %v3437_v16  ;;  %v848_v5 = vld [vmem:[#allocation10 + $0xc] sm:$0xf] }
 0x36f   :  { %2673 = vmatprep.subr.bf16.mxu1 %v3273_v2  ;;  %2665 = vmatprep.subr.bf16.mxu0 %v3273_v2 }
 0x370   :  { %2687 = vmatprep.mubr.msk.bf16.mxu1 %vm3275_vm0, %v3273_v2 }
 0x372   :  { %2674 = vmatpush3.bf16.msra.mxu1 %v3399_v7  ;;  %2666 = vmatpush3.bf16.msra.mxu0 %v3445_v18 }
 0x373   :  { %2675 = vmatprep.subr.bf16.mxu1 %v3273_v2  ;;  %2691 = vmatprep.subr.bf16.mxu0 %v3273_v2 }
 0x374   :  { %v857_v48 = vld [vmem:[#allocation2] sm:$0xf] }
 0x375   :  { %2668 = vmatmul.mubr.bf16.vlgmr.msra.gmra.mrb[24].mxu0 %v857_v48 }
 0x376   :  { %2676 = vmatpush3.bf16.msra.mxu1 %v3407_v9  ;;  %2692 = vmatpush3.bf16.msra.mxu0 %v3452_v22 }
 0x377   :  { %2677 = vmatprep.subr.bf16.mxu1 %v3273_v2  ;;  %2693 = vmatprep.subr.bf16.mxu0 %v3273_v2 }
 0x378   :  { %2707 = vmatprep.mubr.msk.bf16.mxu0 %vm3275_vm0, %v3273_v2 }
 0x37a   :  { %2678 = vmatpush3.bf16.msra.mxu1 %v3415_v11  ;;  %2694 = vmatpush3.bf16.msra.mxu0 %v3460_v24 }
 0x37b   :  { %2679 = vmatprep.subr.bf16.mxu1 %v3273_v2  ;;  %2695 = vmatprep.subr.bf16.mxu0 %v3273_v2 }
 0x37e   :  { %2680 = vmatpush3.bf16.msra.mxu1 %v3423_v13  ;;  %2696 = vmatpush3.bf16.msra.mxu0 %v3472_v26 }
 0x37f   :  { %2681 = vmatprep.subr.bf16.mxu1 %v3273_v2  ;;  %2697 = vmatprep.subr.bf16.mxu0 %v3273_v2 }
 0x382   :  { %2682 = vmatpush3.bf16.msra.mxu1 %v3431_v15  ;;  %2698 = vmatpush3.bf16.msra.mxu0 %v3480_v28 }
 0x383   :  { %2683 = vmatprep.subr.bf16.mxu1 %v3273_v2  ;;  %2699 = vmatprep.subr.bf16.mxu0 %v3273_v2 }
 0x386   :  { %2684 = vmatpush3.bf16.msra.mxu1 %v3439_v17  ;;  %2700 = vmatpush3.bf16.msra.mxu0 %v3488_v30 }
 0x387   :  { %2685 = vmatprep.subr.bf16.mxu1 %v3273_v2  ;;  %2701 = vmatprep.subr.bf16.mxu0 %v3273_v2 }
 0x38a   :  { %2686 = vmatpush3.bf16.msra.mxu1 %v3447_v19  ;;  %2702 = vmatpush3.bf16.msra.mxu0 %v3493_v31 }
 0x38b   :  { %2711 = vmatprep.subr.bf16.mxu1 %v3273_v2  ;;  %2703 = vmatprep.subr.bf16.mxu0 %v3273_v2 }
 0x38d   :  { %2688 = vmatmul.mubr.bf16.vlgmr.msra.gmra.mrb[24].mxu1 %v848_v5 }
 0x38e   :  { %2712 = vmatpush3.bf16.msra.mxu1 %v3455_v23  ;;  %2704 = vmatpush3.bf16.msra.mxu0 %v3497_v32 }
 0x38f   :  { %2713 = vmatprep.subr.bf16.mxu1 %v3273_v2  ;;  %2705 = vmatprep.subr.bf16.mxu0 %v3273_v2 }
 0x390   :  { %2727 = vmatprep.mubr.msk.bf16.mxu1 %vm3275_vm0, %v3273_v2 }
 0x392   :  { %2714 = vmatpush3.bf16.msra.mxu1 %v3463_v25  ;;  %2706 = vmatpush3.bf16.msra.mxu0 %v3501_v33 }
 0x393   :  { %2715 = vmatprep.subr.bf16.mxu1 %v3273_v2  ;;  %2731 = vmatprep.subr.bf16.mxu0 %v3273_v2 }
 0x396   :  { %2716 = vmatpush3.bf16.msra.mxu1 %v3475_v27 }
 0x397   :  { %2717 = vmatprep.subr.bf16.mxu1 %v3273_v2 }
 0x39a   :  { %2718 = vmatpush3.bf16.msra.mxu1 %v3483_v29 }
 0x39b   :  { %2719 = vmatprep.subr.bf16.mxu1 %v3273_v2 }
 0x39e   :  { %2720 = vmatpush3.bf16.msra.mxu1 %v3523_v35 }
 0x39f   :  { %2721 = vmatprep.subr.bf16.mxu1 %v3273_v2 }
 0x3a2   :  { %2722 = vmatpush3.bf16.msra.mxu1 %v3527_v36 }
 0x3a3   :  { %2723 = vmatprep.subr.bf16.mxu1 %v3273_v2 }
 0x3a6   :  { %2724 = vmatpush3.bf16.msra.mxu1 %v3531_v37  ;;  %v3762_v37 = vld [vmem:[#allocation3] sm:$0xff] }
 0x3a7   :  { %2725 = vmatprep.subr.bf16.mxu1 %v3273_v2 }
 0x3aa   :  { %2726 = vmatpush3.bf16.msra.mxu1 %v3535_v38 }
 0x3ab   :  { %2751 = vmatprep.subr.bf16.mxu1 %v3273_v2 }
 0x428   :  { %v790_v7 = vpop.f32.mrb[20].mxu0 }
 0x429   :  { %v2629_v9 = vpop.f32.mrb[21].mxu0 }
 0x42a   :  { %v793_v11 = vpop.f32.mrb[22].mxu0 }
 0x42b   :  { %v2630_v13 = vpop.f32.mrb[23].mxu0 }
 0x440   :  { %v830_v15 = vpop.f32.mrb[20].mxu1 }
 0x441   :  { %v831_v16 = vadd.f32 %v830_v15, %v790_v7  ;;  %v2649_v17 = vpop.f32.mrb[21].mxu1 }
 0x442   :  { %v833_v18 = vpop.f32.mrb[22].mxu1 }
 0x443   :  { %v843_v19 = vadd.f32 %v3596_v59, %v831_v16  ;;  %v2650_v22 = vpop.f32.mrb[23].mxu1  ;;  %v3873_v18 = vld [vmem:[#allocation5] sm:$0xff] }
 0x445   :  { %3092 = vtanh.f32 %v843_v19 }
 0x448   :  { %v900_v23 = vpop.f32.mrb[24].mxu0 }
 0x449   :  { %v2669_v24 = vpop.f32.mrb[25].mxu0 }
 0x44a   :  { %v903_v25 = vpop.f32.mrb[26].mxu0  ;;  %v3885_v24 = vld [vmem:[#allocation5 + $0x10] sm:$0xff] }
 0x44b   :  { %v2670_v26 = vpop.f32.mrb[27].mxu0 }
 0x44f   :  { %v3093_v27 = vpop.eup %3092 }
 0x450   :  { %v845_v28 = vpack.c.bf16 %v3093_v27, %v3093_v27 }
 0x452   :  { %846 = vst [vmem:[#allocation2 + $0x4] sm:$0xf] %v845_v28 }
 0x459   :  { %v965_v29 = vld [vmem:[#allocation2 + $0x4] sm:$0xf] }
 0x45a   :  { %2708 = vmatmul.mubr.bf16.vlgmr.msra.gmra.mrb[28].mxu0 %v965_v29 }
 0x45b   :  { %2732 = vmatpush3.bf16.msra.mxu0 %v3389_v4  ;;  %2747 = vmatprep.mubr.msk.bf16.mxu0 %vm3275_vm0, %v3273_v2 }
 0x45c   :  { %2733 = vmatprep.subr.bf16.mxu0 %v3273_v2 }
 0x45f   :  { %2734 = vmatpush3.bf16.msra.mxu0 %v3397_v6 }
 0x460   :  { %v940_v30 = vpop.f32.mrb[24].mxu1  ;;  %2735 = vmatprep.subr.bf16.mxu0 %v3273_v2 }
 0x461   :  { %v941_v31 = vadd.f32 %v940_v30, %v900_v23  ;;  %v2689_v32 = vpop.f32.mrb[25].mxu1  ;;  %v3882_v23 = vld [vmem:[#allocation6] ss:$0 sm:$0xff]  ;;  %v3890_v30 = vld [vmem:[#allocation5 + $0x18] sm:$0xff] }
 0x462   :  { %v943_v33 = vpop.f32.mrb[26].mxu1  ;;  %v3898_v32 = vld [vmem:[#allocation5 + $0x28] sm:$0xff] }
 0x463   :  { %v953_v35 = vadd.f32 %v3539_v41, %v941_v31  ;;  %v2690_v36 = vpop.f32.mrb[27].mxu1  ;;  %2736 = vmatpush3.bf16.msra.mxu0 %v3405_v8  ;;  %v3764_v8 = vld [vmem:[#allocation5 + $0x30] sm:$0xff]  ;;  %v3786_v41 = vld [vmem:[#allocation3 + $0x18] sm:$0xff]  ;;  %v3894_v31 = vld [vmem:[#allocation5 + $0x20] sm:$0xff] }
 0x464   :  { %2737 = vmatprep.subr.bf16.mxu0 %v3273_v2 }
 0x465   :  { %3094 = vtanh.f32 %v953_v35 }
 0x467   :  { %2738 = vmatpush3.bf16.msra.mxu0 %v3413_v10  ;;  %v3770_v10 = vld [vmem:[#allocation3 + $0x8] sm:$0xff] }
 0x468   :  { %2739 = vmatprep.subr.bf16.mxu0 %v3273_v2 }
 0x46b   :  { %2740 = vmatpush3.bf16.msra.mxu0 %v3421_v12  ;;  %v3772_v12 = vld [vmem:[#allocation5 + $0x38] sm:$0xff] }
 0x46c   :  { %2741 = vmatprep.subr.bf16.mxu0 %v3273_v2 }
 0x46f   :  { %v3095_v4 = vpop.eup %3094  ;;  %2742 = vmatpush3.bf16.msra.mxu0 %v3429_v14  ;;  %v3779_v14 = vld [vmem:[#allocation3 + $0x10] sm:$0xff] }
 0x470   :  { %v955_v6 = vpack.c.bf16 %v3095_v4, %v3095_v4  ;;  %2743 = vmatprep.subr.bf16.mxu0 %v3273_v2  ;;  %v1284_v4 = vld [vmem:[#allocation10 + $0x14] sm:$0xf] }
 0x472   :  { %956 = vst [vmem:[#allocation2] sm:$0xf] %v955_v6  ;;  %2728 = vmatmul.mubr.bf16.vlgmr.msra.gmra.mrb[28].mxu1 %v955_v6 }
 0x473   :  { %2752 = vmatpush3.bf16.msra.mxu1 %v3762_v37  ;;  %2744 = vmatpush3.bf16.msra.mxu0 %v3764_v8 }
 0x474   :  { %2753 = vmatprep.subr.bf16.mxu1 %v3273_v2  ;;  %2745 = vmatprep.subr.bf16.mxu0 %v3273_v2 }
 0x475   :  { %2767 = vmatprep.mubr.msk.bf16.mxu1 %vm3275_vm0, %v3273_v2 }
 0x477   :  { %2754 = vmatpush3.bf16.msra.mxu1 %v3770_v10  ;;  %2746 = vmatpush3.bf16.msra.mxu0 %v3772_v12 }
 0x478   :  { %2755 = vmatprep.subr.bf16.mxu1 %v3273_v2  ;;  %2771 = vmatprep.subr.bf16.mxu0 %v3273_v2 }
 0x479   :  { %v1075_v38 = vld [vmem:[#allocation2] sm:$0xf] }
 0x47a   :  { %2748 = vmatmul.mubr.bf16.vlgmr.msra.gmra.mrb[32].mxu0 %v1075_v38 }
 0x47b   :  { %2756 = vmatpush3.bf16.msra.mxu1 %v3779_v14  ;;  %2787 = vmatprep.mubr.msk.bf16.mxu0 %vm3275_vm0, %v3273_v2 }
 0x47c   :  { %2757 = vmatprep.subr.bf16.mxu1 %v3273_v2  ;;  %2772 = vmatpush3.bf16.msra.mxu0 %v3808_v54 }
 0x47d   :  { %2773 = vmatprep.subr.bf16.mxu0 %v3273_v2 }
 0x47f   :  { %2758 = vmatpush3.bf16.msra.mxu1 %v3786_v41 }
 0x480   :  { %2759 = vmatprep.subr.bf16.mxu1 %v3273_v2  ;;  %2774 = vmatpush3.bf16.msra.mxu0 %v3812_v55 }
 0x481   :  { %2775 = vmatprep.subr.bf16.mxu0 %v3273_v2 }
 0x483   :  { %2760 = vmatpush3.bf16.msra.mxu1 %v3790_v49 }
 0x484   :  { %2761 = vmatprep.subr.bf16.mxu1 %v3273_v2  ;;  %2776 = vmatpush3.bf16.msra.mxu0 %v3816_v56 }
 0x485   :  { %2777 = vmatprep.subr.bf16.mxu0 %v3273_v2 }
 0x487   :  { %2762 = vmatpush3.bf16.msra.mxu1 %v3794_v50 }
 0x488   :  { %2763 = vmatprep.subr.bf16.mxu1 %v3273_v2  ;;  %2778 = vmatpush3.bf16.msra.mxu0 %v3820_v57 }
 0x489   :  { %2779 = vmatprep.subr.bf16.mxu0 %v3273_v2 }
 0x48b   :  { %2764 = vmatpush3.bf16.msra.mxu1 %v3798_v51 }
 0x48c   :  { %2765 = vmatprep.subr.bf16.mxu1 %v3273_v2  ;;  %2780 = vmatpush3.bf16.msra.mxu0 %v3824_v58 }
 0x48d   :  { %2781 = vmatprep.subr.bf16.mxu0 %v3273_v2 }
 0x48f   :  { %2766 = vmatpush3.bf16.msra.mxu1 %v3802_v52 }
 0x490   :  { %2791 = vmatprep.subr.bf16.mxu1 %v3273_v2  ;;  %2782 = vmatpush3.bf16.msra.mxu0 %v3828_v60 }
 0x491   :  { %2783 = vmatprep.subr.bf16.mxu0 %v3273_v2 }
 0x492   :  { %2768 = vmatmul.mubr.bf16.vlgmr.msra.gmra.mrb[32].mxu1 %v1066_v53 }
 0x493   :  { %2807 = vmatprep.mubr.msk.bf16.mxu1 %vm3275_vm0, %v3273_v2  ;;  %2792 = vmatpush3.bf16.msra.mxu1 %v3832_v61 }
 0x494   :  { %2784 = vmatpush3.bf16.msra.mxu0 %v3835_v62  ;;  %2793 = vmatprep.subr.bf16.mxu1 %v3273_v2 }
 0x495   :  { %2785 = vmatprep.subr.bf16.mxu0 %v3273_v2 }
 0x497   :  { %2794 = vmatpush3.bf16.msra.mxu1 %v3839_v63 }
 0x498   :  { %2786 = vmatpush3.bf16.msra.mxu0 %v3842_v0  ;;  %2795 = vmatprep.subr.bf16.mxu1 %v3273_v2 }
 0x499   :  { %2811 = vmatprep.subr.bf16.mxu0 %v3273_v2 }
 0x49b   :  { %2796 = vmatpush3.bf16.msra.mxu1 %v3847_v1 }
 0x49c   :  { %2797 = vmatprep.subr.bf16.mxu1 %v3273_v2 }
 0x49f   :  { %2798 = vmatpush3.bf16.msra.mxu1 %v3852_v3 }
 0x4a0   :  { %2799 = vmatprep.subr.bf16.mxu1 %v3273_v2 }
 0x4a3   :  { %2800 = vmatpush3.bf16.msra.mxu1 %v3856_v20 }
 0x4a4   :  { %2801 = vmatprep.subr.bf16.mxu1 %v3273_v2 }
 0x4a7   :  { %2802 = vmatpush3.bf16.msra.mxu1 %v3860_v21 }
 0x4a8   :  { %2803 = vmatprep.subr.bf16.mxu1 %v3273_v2 }
 0x4ab   :  { %2804 = vmatpush3.bf16.msra.mxu1 %v3864_v34 }
 0x4ac   :  { %2805 = vmatprep.subr.bf16.mxu1 %v3273_v2 }
 0x4af   :  { %2806 = vmatpush3.bf16.msra.mxu1 %v3868_v39 }
 0x4b0   :  { %2831 = vmatprep.subr.bf16.mxu1 %v3273_v2 }
 0x52d   :  { %v1008_v40 = vpop.f32.mrb[28].mxu0 }
 0x52e   :  { %v2709_v42 = vpop.f32.mrb[29].mxu0 }
 0x52f   :  { %v1011_v43 = vpop.f32.mrb[30].mxu0 }
 0x530   :  { %v2710_v44 = vpop.f32.mrb[31].mxu0  ;;  %v3960_v43 = vld [vmem:[#allocation6 + $0x1] ss:$0 sm:$0xff] }
 0x545   :  { %v1048_v45 = vpop.f32.mrb[28].mxu1 }
 0x546   :  { %v1049_v46 = vadd.f32 %v1048_v45, %v1008_v40  ;;  %v2729_v47 = vpop.f32.mrb[29].mxu1 }
 0x547   :  { %v1051_v48 = vpop.f32.mrb[30].mxu1 }
 0x548   :  { %v1061_v5 = vadd.f32 %v3596_v59, %v1049_v46  ;;  %v2730_v7 = vpop.f32.mrb[31].mxu1  ;;  %v3879_v59 = vld [vmem:[#allocation5 + $0x8] sm:$0xff] }
 0x54a   :  { %3096 = vtanh.f32 %v1061_v5 }
 0x54d   :  { %v1118_v9 = vpop.f32.mrb[32].mxu0 }
 0x54e   :  { %v2749_v11 = vpop.f32.mrb[33].mxu0 }
 0x54f   :  { %v1121_v13 = vpop.f32.mrb[34].mxu0 }
 0x550   :  { %v2750_v15 = vpop.f32.mrb[35].mxu0 }
 0x554   :  { %v3097_v16 = vpop.eup %3096 }
 0x555   :  { %v1063_v17 = vpack.c.bf16 %v3097_v16, %v3097_v16 }
 0x557   :  { %1064 = vst [vmem:[#allocation2 + $0x4] sm:$0xf] %v1063_v17 }
 0x55e   :  { %v1183_v19 = vld [vmem:[#allocation2 + $0x4] sm:$0xf] }
 0x55f   :  { %2788 = vmatmul.mubr.bf16.vlgmr.msra.gmra.mrb[36].mxu0 %v1183_v19 }
 0x560   :  { %2812 = vmatpush3.bf16.msra.mxu0 %v3873_v18  ;;  %2827 = vmatprep.mubr.msk.bf16.mxu0 %vm3275_vm0, %v3273_v2 }
 0x561   :  { %2813 = vmatprep.subr.bf16.mxu0 %v3273_v2 }
 0x564   :  { %2814 = vmatpush3.bf16.msra.mxu0 %v3879_v59 }
 0x565   :  { %v1158_v22 = vpop.f32.mrb[32].mxu1  ;;  %2815 = vmatprep.subr.bf16.mxu0 %v3273_v2 }
 0x566   :  { %v1159_v25 = vadd.f32 %v1158_v22, %v1118_v9  ;;  %v2769_v26 = vpop.f32.mrb[33].mxu1 }
 0x567   :  { %v1161_v27 = vpop.f32.mrb[34].mxu1 }
 0x568   :  { %v1171_v28 = vadd.f32 %v3882_v23, %v1159_v25  ;;  %v2770_v29 = vpop.f32.mrb[35].mxu1  ;;  %2816 = vmatpush3.bf16.msra.mxu0 %v3885_v24 }
 0x569   :  { %2817 = vmatprep.subr.bf16.mxu0 %v3273_v2 }
 0x56a   :  { %3098 = vtanh.f32 %v1171_v28 }
 0x56c   :  { %2818 = vmatpush3.bf16.msra.mxu0 %v3890_v30 }
 0x56d   :  { %2819 = vmatprep.subr.bf16.mxu0 %v3273_v2 }
 0x570   :  { %2820 = vmatpush3.bf16.msra.mxu0 %v3894_v31 }
 0x571   :  { %2821 = vmatprep.subr.bf16.mxu0 %v3273_v2 }
 0x574   :  { %v3099_v33 = vpop.eup %3098  ;;  %2822 = vmatpush3.bf16.msra.mxu0 %v3898_v32 }
 0x575   :  { %v1173_v35 = vpack.c.bf16 %v3099_v33, %v3099_v33  ;;  %2823 = vmatprep.subr.bf16.mxu0 %v3273_v2 }
 0x577   :  { %1174 = vst [vmem:[#allocation2] sm:$0xf] %v1173_v35  ;;  %2808 = vmatmul.mubr.bf16.vlgmr.msra.gmra.mrb[36].mxu1 %v1173_v35  ;;  %v1502_v35 = vld [vmem:[#allocation10 + $0x18] sm:$0xf] }
 0x578   :  { %2832 = vmatpush3.bf16.msra.mxu1 %v3762_v37  ;;  %2824 = vmatpush3.bf16.msra.mxu0 %v3764_v8 }
 0x579   :  { %2833 = vmatprep.subr.bf16.mxu1 %v3273_v2  ;;  %2825 = vmatprep.subr.bf16.mxu0 %v3273_v2 }
 0x57a   :  { %2847 = vmatprep.mubr.msk.bf16.mxu1 %vm3275_vm0, %v3273_v2 }
 0x57c   :  { %2834 = vmatpush3.bf16.msra.mxu1 %v3770_v10  ;;  %2826 = vmatpush3.bf16.msra.mxu0 %v3772_v12 }
 0x57d   :  { %2835 = vmatprep.subr.bf16.mxu1 %v3273_v2  ;;  %2851 = vmatprep.subr.bf16.mxu0 %v3273_v2 }
 0x57e   :  { %v1293_v36 = vld [vmem:[#allocation2] sm:$0xf] }
 0x57f   :  { %2828 = vmatmul.mubr.bf16.vlgmr.msra.gmra.mrb[40].mxu0 %v1293_v36 }
 0x580   :  { %2836 = vmatpush3.bf16.msra.mxu1 %v3779_v14  ;;  %2852 = vmatpush3.bf16.msra.mxu0 %v3808_v54 }
 0x581   :  { %2837 = vmatprep.subr.bf16.mxu1 %v3273_v2  ;;  %2853 = vmatprep.subr.bf16.mxu0 %v3273_v2 }
 0x582   :  { %2867 = vmatprep.mubr.msk.bf16.mxu0 %vm3275_vm0, %v3273_v2 }
 0x584   :  { %2838 = vmatpush3.bf16.msra.mxu1 %v3786_v41  ;;  %2854 = vmatpush3.bf16.msra.mxu0 %v3812_v55 }
 0x585   :  { %2839 = vmatprep.subr.bf16.mxu1 %v3273_v2  ;;  %2855 = vmatprep.subr.bf16.mxu0 %v3273_v2 }
 0x588   :  { %2840 = vmatpush3.bf16.msra.mxu1 %v3790_v49  ;;  %2856 = vmatpush3.bf16.msra.mxu0 %v3816_v56 }
 0x589   :  { %2841 = vmatprep.subr.bf16.mxu1 %v3273_v2  ;;  %2857 = vmatprep.subr.bf16.mxu0 %v3273_v2 }
 0x58c   :  { %2842 = vmatpush3.bf16.msra.mxu1 %v3794_v50  ;;  %2858 = vmatpush3.bf16.msra.mxu0 %v3820_v57 }
 0x58d   :  { %2843 = vmatprep.subr.bf16.mxu1 %v3273_v2  ;;  %2859 = vmatprep.subr.bf16.mxu0 %v3273_v2 }
 0x590   :  { %2844 = vmatpush3.bf16.msra.mxu1 %v3798_v51  ;;  %2860 = vmatpush3.bf16.msra.mxu0 %v3824_v58 }
 0x591   :  { %2845 = vmatprep.subr.bf16.mxu1 %v3273_v2  ;;  %2861 = vmatprep.subr.bf16.mxu0 %v3273_v2 }
 0x594   :  { %2846 = vmatpush3.bf16.msra.mxu1 %v3802_v52  ;;  %2862 = vmatpush3.bf16.msra.mxu0 %v3828_v60 }
 0x595   :  { %2871 = vmatprep.subr.bf16.mxu1 %v3273_v2  ;;  %2863 = vmatprep.subr.bf16.mxu0 %v3273_v2 }
 0x597   :  { %2848 = vmatmul.mubr.bf16.vlgmr.msra.gmra.mrb[40].mxu1 %v1284_v4 }
 0x598   :  { %2872 = vmatpush3.bf16.msra.mxu1 %v3832_v61  ;;  %2864 = vmatpush3.bf16.msra.mxu0 %v3835_v62 }
 0x599   :  { %2873 = vmatprep.subr.bf16.mxu1 %v3273_v2  ;;  %2865 = vmatprep.subr.bf16.mxu0 %v3273_v2 }
 0x59a   :  { %2887 = vmatprep.mubr.msk.bf16.mxu1 %vm3275_vm0, %v3273_v2 }
 0x59c   :  { %2874 = vmatpush3.bf16.msra.mxu1 %v3839_v63  ;;  %2866 = vmatpush3.bf16.msra.mxu0 %v3842_v0 }
 0x59d   :  { %2875 = vmatprep.subr.bf16.mxu1 %v3273_v2  ;;  %2891 = vmatprep.subr.bf16.mxu0 %v3273_v2 }
 0x5a0   :  { %2876 = vmatpush3.bf16.msra.mxu1 %v3847_v1 }
 0x5a1   :  { %2877 = vmatprep.subr.bf16.mxu1 %v3273_v2 }
 0x5a4   :  { %2878 = vmatpush3.bf16.msra.mxu1 %v3852_v3 }
 0x5a5   :  { %2879 = vmatprep.subr.bf16.mxu1 %v3273_v2 }
 0x5a8   :  { %2880 = vmatpush3.bf16.msra.mxu1 %v3856_v20 }
 0x5a9   :  { %2881 = vmatprep.subr.bf16.mxu1 %v3273_v2 }
 0x5ac   :  { %2882 = vmatpush3.bf16.msra.mxu1 %v3860_v21 }
 0x5ad   :  { %2883 = vmatprep.subr.bf16.mxu1 %v3273_v2 }
 0x5b0   :  { %2884 = vmatpush3.bf16.msra.mxu1 %v3864_v34 }
 0x5b1   :  { %2885 = vmatprep.subr.bf16.mxu1 %v3273_v2 }
 0x5b4   :  { %2886 = vmatpush3.bf16.msra.mxu1 %v3868_v39 }
 0x5b5   :  { %2911 = vmatprep.subr.bf16.mxu1 %v3273_v2 }
 0x632   :  { %v1226_v6 = vpop.f32.mrb[36].mxu0 }
 0x633   :  { %v2789_v38 = vpop.f32.mrb[37].mxu0 }
 0x634   :  { %v1229_v53 = vpop.f32.mrb[38].mxu0 }
 0x635   :  { %v2790_v40 = vpop.f32.mrb[39].mxu0 }
 0x64a   :  { %v1266_v42 = vpop.f32.mrb[36].mxu1 }
 0x64b   :  { %v1267_v44 = vadd.f32 %v1266_v42, %v1226_v6  ;;  %v2809_v45 = vpop.f32.mrb[37].mxu1 }
 0x64c   :  { %v1269_v46 = vpop.f32.mrb[38].mxu1 }
 0x64d   :  { %v1279_v47 = vadd.f32 %v3960_v43, %v1267_v44  ;;  %v2810_v48 = vpop.f32.mrb[39].mxu1 }
 0x64f   :  { %3100 = vtanh.f32 %v1279_v47 }
 0x652   :  { %v1336_v5 = vpop.f32.mrb[40].mxu0 }
 0x653   :  { %v2829_v7 = vpop.f32.mrb[41].mxu0 }
 0x654   :  { %v1339_v9 = vpop.f32.mrb[42].mxu0 }
 0x655   :  { %v2830_v11 = vpop.f32.mrb[43].mxu0 }
 0x659   :  { %v3101_v13 = vpop.eup %3100 }
 0x65a   :  { %v1281_v15 = vpack.c.bf16 %v3101_v13, %v3101_v13 }
 0x65c   :  { %1282 = vst [vmem:[#allocation2 + $0x4] sm:$0xf] %v1281_v15 }
 0x663   :  { %v1401_v16 = vld [vmem:[#allocation2 + $0x4] sm:$0xf] }
 0x664   :  { %2868 = vmatmul.mubr.bf16.vlgmr.msra.gmra.mrb[44].mxu0 %v1401_v16 }
 0x665   :  { %2892 = vmatpush3.bf16.msra.mxu0 %v3873_v18  ;;  %2907 = vmatprep.mubr.msk.bf16.mxu0 %vm3275_vm0, %v3273_v2 }
 0x666   :  { %2893 = vmatprep.subr.bf16.mxu0 %v3273_v2 }
 0x669   :  { %2894 = vmatpush3.bf16.msra.mxu0 %v3879_v59 }
 0x66a   :  { %v1376_v17 = vpop.f32.mrb[40].mxu1  ;;  %2895 = vmatprep.subr.bf16.mxu0 %v3273_v2 }
 0x66b   :  { %v1377_v19 = vadd.f32 %v1376_v17, %v1336_v5  ;;  %v2849_v22 = vpop.f32.mrb[41].mxu1 }
 0x66c   :  { %v1379_v25 = vpop.f32.mrb[42].mxu1 }
 0x66d   :  { %v1389_v26 = vadd.f32 %v3882_v23, %v1377_v19  ;;  %v2850_v27 = vpop.f32.mrb[43].mxu1  ;;  %2896 = vmatpush3.bf16.msra.mxu0 %v3885_v24 }
 0x66e   :  { %2897 = vmatprep.subr.bf16.mxu0 %v3273_v2 }
 0x66f   :  { %3102 = vtanh.f32 %v1389_v26 }
 0x671   :  { %2898 = vmatpush3.bf16.msra.mxu0 %v3890_v30 }
 0x672   :  { %2899 = vmatprep.subr.bf16.mxu0 %v3273_v2 }
 0x675   :  { %2900 = vmatpush3.bf16.msra.mxu0 %v3894_v31 }
 0x676   :  { %2901 = vmatprep.subr.bf16.mxu0 %v3273_v2 }
 0x679   :  { %v3103_v28 = vpop.eup %3102  ;;  %2902 = vmatpush3.bf16.msra.mxu0 %v3898_v32 }
 0x67a   :  { %v1391_v29 = vpack.c.bf16 %v3103_v28, %v3103_v28  ;;  %2903 = vmatprep.subr.bf16.mxu0 %v3273_v2 }
 0x67c   :  { %1392 = vst [vmem:[#allocation2] sm:$0xf] %v1391_v29  ;;  %2888 = vmatmul.mubr.bf16.vlgmr.msra.gmra.mrb[44].mxu1 %v1391_v29 }
 0x67d   :  { %2912 = vmatpush3.bf16.msra.mxu1 %v3762_v37  ;;  %2904 = vmatpush3.bf16.msra.mxu0 %v3764_v8 }
 0x67e   :  { %2913 = vmatprep.subr.bf16.mxu1 %v3273_v2  ;;  %2905 = vmatprep.subr.bf16.mxu0 %v3273_v2 }
 0x67f   :  { %2927 = vmatprep.mubr.msk.bf16.mxu1 %vm3275_vm0, %v3273_v2 }
 0x681   :  { %2914 = vmatpush3.bf16.msra.mxu1 %v3770_v10  ;;  %2906 = vmatpush3.bf16.msra.mxu0 %v3772_v12 }
 0x682   :  { %2915 = vmatprep.subr.bf16.mxu1 %v3273_v2  ;;  %2931 = vmatprep.subr.bf16.mxu0 %v3273_v2 }
 0x683   :  { %v1511_v33 = vld [vmem:[#allocation2] sm:$0xf] }
 0x684   :  { %2908 = vmatmul.mubr.bf16.vlgmr.msra.gmra.mrb[48].mxu0 %v1511_v33 }
 0x685   :  { %2916 = vmatpush3.bf16.msra.mxu1 %v3779_v14  ;;  %2932 = vmatpush3.bf16.msra.mxu0 %v3808_v54 }
 0x686   :  { %2917 = vmatprep.subr.bf16.mxu1 %v3273_v2  ;;  %2933 = vmatprep.subr.bf16.mxu0 %v3273_v2 }
 0x687   :  { %2947 = vmatprep.mubr.msk.bf16.mxu0 %vm3275_vm0, %v3273_v2 }
 0x689   :  { %2918 = vmatpush3.bf16.msra.mxu1 %v3786_v41  ;;  %2934 = vmatpush3.bf16.msra.mxu0 %v3812_v55 }
 0x68a   :  { %2919 = vmatprep.subr.bf16.mxu1 %v3273_v2  ;;  %2935 = vmatprep.subr.bf16.mxu0 %v3273_v2 }
 0x68d   :  { %2920 = vmatpush3.bf16.msra.mxu1 %v3790_v49  ;;  %2936 = vmatpush3.bf16.msra.mxu0 %v3816_v56 }
 0x68e   :  { %2921 = vmatprep.subr.bf16.mxu1 %v3273_v2  ;;  %2937 = vmatprep.subr.bf16.mxu0 %v3273_v2 }
 0x691   :  { %2922 = vmatpush3.bf16.msra.mxu1 %v3794_v50  ;;  %2938 = vmatpush3.bf16.msra.mxu0 %v3820_v57 }
 0x692   :  { %2923 = vmatprep.subr.bf16.mxu1 %v3273_v2  ;;  %2939 = vmatprep.subr.bf16.mxu0 %v3273_v2 }
 0x695   :  { %2924 = vmatpush3.bf16.msra.mxu1 %v3798_v51  ;;  %2940 = vmatpush3.bf16.msra.mxu0 %v3824_v58 }
 0x696   :  { %2925 = vmatprep.subr.bf16.mxu1 %v3273_v2  ;;  %2941 = vmatprep.subr.bf16.mxu0 %v3273_v2 }
 0x699   :  { %2926 = vmatpush3.bf16.msra.mxu1 %v3802_v52  ;;  %2942 = vmatpush3.bf16.msra.mxu0 %v3828_v60 }
 0x69a   :  { %2951 = vmatprep.subr.bf16.mxu1 %v3273_v2  ;;  %2943 = vmatprep.subr.bf16.mxu0 %v3273_v2 }
 0x69c   :  { %2928 = vmatmul.mubr.bf16.vlgmr.msra.gmra.mrb[48].mxu1 %v1502_v35 }
 0x69d   :  { %2952 = vmatpush3.bf16.msra.mxu1 %v3832_v61  ;;  %2944 = vmatpush3.bf16.msra.mxu0 %v3835_v62 }
 0x69e   :  { %2953 = vmatprep.subr.bf16.mxu1 %v3273_v2  ;;  %2945 = vmatprep.subr.bf16.mxu0 %v3273_v2 }
 0x69f   :  { %2967 = vmatprep.mubr.msk.bf16.mxu1 %vm3275_vm0, %v3273_v2 }
 0x6a1   :  { %2954 = vmatpush3.bf16.msra.mxu1 %v3839_v63  ;;  %2946 = vmatpush3.bf16.msra.mxu0 %v3842_v0 }
 0x6a2   :  { %2955 = vmatprep.subr.bf16.mxu1 %v3273_v2  ;;  %2971 = vmatprep.subr.bf16.mxu0 %v3273_v2 }
 0x6a5   :  { %2956 = vmatpush3.bf16.msra.mxu1 %v3847_v1 }
 0x6a6   :  { %2957 = vmatprep.subr.bf16.mxu1 %v3273_v2 }
 0x6a9   :  { %2958 = vmatpush3.bf16.msra.mxu1 %v3852_v3 }
 0x6aa   :  { %2959 = vmatprep.subr.bf16.mxu1 %v3273_v2 }
 0x6ad   :  { %2960 = vmatpush3.bf16.msra.mxu1 %v3856_v20 }
 0x6ae   :  { %2961 = vmatprep.subr.bf16.mxu1 %v3273_v2 }
 0x6b1   :  { %2962 = vmatpush3.bf16.msra.mxu1 %v3860_v21 }
 0x6b2   :  { %2963 = vmatprep.subr.bf16.mxu1 %v3273_v2 }
 0x6b5   :  { %2964 = vmatpush3.bf16.msra.mxu1 %v3864_v34 }
 0x6b6   :  { %2965 = vmatprep.subr.bf16.mxu1 %v3273_v2 }
 0x6b9   :  { %2966 = vmatpush3.bf16.msra.mxu1 %v3868_v39 }
 0x6ba   :  { %2991 = vmatprep.subr.bf16.mxu1 %v3273_v2 }
 0x737   :  { %v1444_v36 = vpop.f32.mrb[44].mxu0 }
 0x738   :  { %v2869_v4 = vpop.f32.mrb[45].mxu0 }
 0x739   :  { %v1447_v6 = vpop.f32.mrb[46].mxu0 }
 0x73a   :  { %v2870_v38 = vpop.f32.mrb[47].mxu0 }
 0x74f   :  { %v1484_v53 = vpop.f32.mrb[44].mxu1 }
 0x750   :  { %v1485_v40 = vadd.f32 %v1484_v53, %v1444_v36  ;;  %v2889_v42 = vpop.f32.mrb[45].mxu1 }
 0x751   :  { %v1487_v44 = vpop.f32.mrb[46].mxu1 }
 0x752   :  { %v1497_v45 = vadd.f32 %v3960_v43, %v1485_v40  ;;  %v2890_v46 = vpop.f32.mrb[47].mxu1 }
 0x754   :  { %3104 = vtanh.f32 %v1497_v45 }
 0x757   :  { %v1554_v47 = vpop.f32.mrb[48].mxu0 }
 0x758   :  { %v2909_v48 = vpop.f32.mrb[49].mxu0 }
 0x759   :  { %v1557_v5 = vpop.f32.mrb[50].mxu0 }
 0x75a   :  { %v2910_v7 = vpop.f32.mrb[51].mxu0 }
 0x75e   :  { %v3105_v9 = vpop.eup %3104 }
 0x75f   :  { %v1499_v11 = vpack.c.bf16 %v3105_v9, %v3105_v9 }
 0x761   :  { %1500 = vst [vmem:[#allocation2 + $0x4] sm:$0xf] %v1499_v11 }
 0x768   :  { %v1619_v13 = vld [vmem:[#allocation2 + $0x4] sm:$0xf] }
 0x769   :  { %2948 = vmatmul.mubr.bf16.vlgmr.msra.gmra.mrb[52].mxu0 %v1619_v13 }
 0x76a   :  { %2972 = vmatpush3.bf16.msra.mxu0 %v3873_v18  ;;  %2987 = vmatprep.mubr.msk.bf16.mxu0 %vm3275_vm0, %v3273_v2 }
 0x76b   :  { %2973 = vmatprep.subr.bf16.mxu0 %v3273_v2 }
 0x76e   :  { %2974 = vmatpush3.bf16.msra.mxu0 %v3879_v59 }
 0x76f   :  { %v1594_v15 = vpop.f32.mrb[48].mxu1  ;;  %2975 = vmatprep.subr.bf16.mxu0 %v3273_v2 }
 0x770   :  { %v1595_v16 = vadd.f32 %v1594_v15, %v1554_v47  ;;  %v2929_v17 = vpop.f32.mrb[49].mxu1 }
 0x771   :  { %v1597_v19 = vpop.f32.mrb[50].mxu1 }
 0x772   :  { %v1607_v22 = vadd.f32 %v3882_v23, %v1595_v16  ;;  %v2930_v25 = vpop.f32.mrb[51].mxu1  ;;  %2976 = vmatpush3.bf16.msra.mxu0 %v3885_v24 }
 0x773   :  { %2977 = vmatprep.subr.bf16.mxu0 %v3273_v2 }
 0x774   :  { %3106 = vtanh.f32 %v1607_v22 }
 0x776   :  { %2978 = vmatpush3.bf16.msra.mxu0 %v3890_v30 }
 0x777   :  { %2979 = vmatprep.subr.bf16.mxu0 %v3273_v2 }
 0x77a   :  { %2980 = vmatpush3.bf16.msra.mxu0 %v3894_v31 }
 0x77b   :  { %2981 = vmatprep.subr.bf16.mxu0 %v3273_v2 }
 0x77e   :  { %v3107_v18 = vpop.eup %3106  ;;  %2982 = vmatpush3.bf16.msra.mxu0 %v3898_v32 }
 0x77f   :  { %v1609_v59 = vpack.c.bf16 %v3107_v18, %v3107_v18  ;;  %2983 = vmatprep.subr.bf16.mxu0 %v3273_v2 }
 0x781   :  { %1610 = vst [vmem:[#allocation2] sm:$0xf] %v1609_v59  ;;  %2968 = vmatmul.mubr.bf16.vlgmr.msra.gmra.mrb[52].mxu1 %v1609_v59 }
 0x782   :  { %2992 = vmatpush3.bf16.msra.mxu1 %v3762_v37  ;;  %2984 = vmatpush3.bf16.msra.mxu0 %v3764_v8  ;;  %v1720_v37 = vld [vmem:[#allocation10 + $0x1c] sm:$0xf] }
 0x783   :  { %2993 = vmatprep.subr.bf16.mxu1 %v3273_v2  ;;  %2985 = vmatprep.subr.bf16.mxu0 %v3273_v2 }
 0x784   :  { %3007 = vmatprep.mubr.msk.bf16.mxu1 %vm3275_vm0, %v3273_v2 }
 0x786   :  { %2994 = vmatpush3.bf16.msra.mxu1 %v3770_v10  ;;  %2986 = vmatpush3.bf16.msra.mxu0 %v3772_v12 }
 0x787   :  { %2995 = vmatprep.subr.bf16.mxu1 %v3273_v2  ;;  %3011 = vmatprep.subr.bf16.mxu0 %v3273_v2 }
 0x788   :  { %v1729_v24 = vld [vmem:[#allocation2] sm:$0xf] }
 0x789   :  { %2988 = vmatmul.mubr.bf16.vlgmr.msra.gmra.mrb[56].mxu0 %v1729_v24 }
 0x78a   :  { %2996 = vmatpush3.bf16.msra.mxu1 %v3779_v14  ;;  %3012 = vmatpush3.bf16.msra.mxu0 %v3808_v54 }
 0x78b   :  { %2997 = vmatprep.subr.bf16.mxu1 %v3273_v2  ;;  %3013 = vmatprep.subr.bf16.mxu0 %v3273_v2 }
 0x78c   :  { %3027 = vmatprep.mubr.msk.bf16.mxu0 %vm3275_vm0, %v3273_v2 }
 0x78e   :  { %2998 = vmatpush3.bf16.msra.mxu1 %v3786_v41  ;;  %3014 = vmatpush3.bf16.msra.mxu0 %v3812_v55 }
 0x78f   :  { %2999 = vmatprep.subr.bf16.mxu1 %v3273_v2  ;;  %3015 = vmatprep.subr.bf16.mxu0 %v3273_v2 }
 0x792   :  { %3000 = vmatpush3.bf16.msra.mxu1 %v3790_v49  ;;  %3016 = vmatpush3.bf16.msra.mxu0 %v3816_v56 }
 0x793   :  { %3001 = vmatprep.subr.bf16.mxu1 %v3273_v2  ;;  %3017 = vmatprep.subr.bf16.mxu0 %v3273_v2 }
 0x796   :  { %3002 = vmatpush3.bf16.msra.mxu1 %v3794_v50  ;;  %3018 = vmatpush3.bf16.msra.mxu0 %v3820_v57 }
 0x797   :  { %3003 = vmatprep.subr.bf16.mxu1 %v3273_v2  ;;  %3019 = vmatprep.subr.bf16.mxu0 %v3273_v2 }
 0x79a   :  { %3004 = vmatpush3.bf16.msra.mxu1 %v3798_v51  ;;  %3020 = vmatpush3.bf16.msra.mxu0 %v3824_v58 }
 0x79b   :  { %3005 = vmatprep.subr.bf16.mxu1 %v3273_v2  ;;  %3021 = vmatprep.subr.bf16.mxu0 %v3273_v2 }
 0x79e   :  { %3006 = vmatpush3.bf16.msra.mxu1 %v3802_v52  ;;  %3022 = vmatpush3.bf16.msra.mxu0 %v3828_v60 }
 0x79f   :  { %3031 = vmatprep.subr.bf16.mxu1 %v3273_v2  ;;  %3023 = vmatprep.subr.bf16.mxu0 %v3273_v2 }
 0x7a1   :  { %3008 = vmatmul.mubr.bf16.vlgmr.msra.gmra.mrb[56].mxu1 %v1720_v37 }
 0x7a2   :  { %3032 = vmatpush3.bf16.msra.mxu1 %v3832_v61  ;;  %3024 = vmatpush3.bf16.msra.mxu0 %v3835_v62 }
 0x7a3   :  { %3033 = vmatprep.subr.bf16.mxu1 %v3273_v2  ;;  %3025 = vmatprep.subr.bf16.mxu0 %v3273_v2 }
 0x7a4   :  { %3047 = vmatprep.mubr.msk.bf16.mxu1 %vm3275_vm0, %v3273_v2 }
 0x7a6   :  { %3034 = vmatpush3.bf16.msra.mxu1 %v3839_v63  ;;  %3026 = vmatpush3.bf16.msra.mxu0 %v3842_v0 }
 0x7a7   :  { %3035 = vmatprep.subr.bf16.mxu1 %v3273_v2 }
 0x7aa   :  { %3036 = vmatpush3.bf16.msra.mxu1 %v3847_v1 }
 0x7ab   :  { %3037 = vmatprep.subr.bf16.mxu1 %v3273_v2 }
 0x7ae   :  { %3038 = vmatpush3.bf16.msra.mxu1 %v3852_v3 }
 0x7af   :  { %3039 = vmatprep.subr.bf16.mxu1 %v3273_v2 }
 0x7b2   :  { %3040 = vmatpush3.bf16.msra.mxu1 %v3856_v20 }
 0x7b3   :  { %3041 = vmatprep.subr.bf16.mxu1 %v3273_v2 }
 0x7b6   :  { %3042 = vmatpush3.bf16.msra.mxu1 %v3860_v21 }
 0x7b7   :  { %3043 = vmatprep.subr.bf16.mxu1 %v3273_v2 }
 0x7ba   :  { %3044 = vmatpush3.bf16.msra.mxu1 %v3864_v34 }
 0x7bb   :  { %3045 = vmatprep.subr.bf16.mxu1 %v3273_v2 }
 0x7be   :  { %3046 = vmatpush3.bf16.msra.mxu1 %v3868_v39 }
 0x83c   :  { %v1662_v8 = vpop.f32.mrb[52].mxu0 }
 0x83d   :  { %v2949_v10 = vpop.f32.mrb[53].mxu0 }
 0x83e   :  { %v1665_v12 = vpop.f32.mrb[54].mxu0 }
 0x83f   :  { %v2950_v14 = vpop.f32.mrb[55].mxu0 }
 0x854   :  { %v1702_v41 = vpop.f32.mrb[52].mxu1 }
 0x855   :  { %v1703_v49 = vadd.f32 %v1702_v41, %v1662_v8  ;;  %v2969_v50 = vpop.f32.mrb[53].mxu1 }
 0x856   :  { %v1705_v51 = vpop.f32.mrb[54].mxu1 }
 0x857   :  { %v1715_v52 = vadd.f32 %v3960_v43, %v1703_v49  ;;  %v2970_v54 = vpop.f32.mrb[55].mxu1 }
 0x859   :  { %3108 = vtanh.f32 %v1715_v52 }
 0x85c   :  { %v1772_v55 = vpop.f32.mrb[56].mxu0 }
 0x85d   :  { %v2989_v56 = vpop.f32.mrb[57].mxu0 }
 0x85e   :  { %v1775_v57 = vpop.f32.mrb[58].mxu0 }
 0x85f   :  { %v2990_v58 = vpop.f32.mrb[59].mxu0 }
 0x863   :  { %v3109_v60 = vpop.eup %3108 }
 0x864   :  { %v1717_v61 = vpack.c.bf16 %v3109_v60, %v3109_v60 }
 0x866   :  { %1718 = vst [vmem:[#allocation2 + $0x4] sm:$0xf] %v1717_v61 }
 0x86d   :  { %v1837_v62 = vld [vmem:[#allocation2 + $0x4] sm:$0xf] }
 0x86e   :  { %3028 = vmatmul.mubr.bf16.vlgmr.msra.gmra.mrb[60].mxu0 %v1837_v62 }
 0x874   :  { %v1812_v63 = vpop.f32.mrb[56].mxu1 }
 0x875   :  { %v1813_v0 = vadd.f32 %v1812_v63, %v1772_v55  ;;  %v3009_v1 = vpop.f32.mrb[57].mxu1 }
 0x876   :  { %v1815_v3 = vpop.f32.mrb[58].mxu1 }
 0x877   :  { %v1825_v20 = vadd.f32 %v3882_v23, %v1813_v0  ;;  %v3010_v21 = vpop.f32.mrb[59].mxu1 }
 0x879   :  { %3110 = vtanh.f32 %v1825_v20 }
 0x883   :  { %v3111_v34 = vpop.eup %3110 }
 0x884   :  { %v1827_v39 = vpack.c.bf16 %v3111_v34, %v3111_v34 }
 0x886   :  { %1828 = vst [vmem:[#allocation2] sm:$0xf] %v1827_v39  ;;  %3048 = vmatmul.mubr.bf16.vlgmr.msra.gmra.mrb[60].mxu1 %v1827_v39 }
 0x941   :  { %v1880_v30 = vpop.f32.mrb[60].mxu0 }
 0x942   :  { %v3029_v31 = vpop.f32.mrb[61].mxu0 }
 0x943   :  { %v1883_v32 = vpop.f32.mrb[62].mxu0 }
 0x944   :  { %v3030_v26 = vpop.f32.mrb[63].mxu0 }
 0x959   :  { %v1920_v27 = vpop.f32.mrb[60].mxu1 }
 0x95a   :  { %v1921_v28 = vadd.f32 %v1920_v27, %v1880_v30  ;;  %v3049_v29 = vpop.f32.mrb[61].mxu1 }
 0x95b   :  { %v1923_v33 = vpop.f32.mrb[62].mxu1 }
 0x95c   :  { %v1933_v35 = vadd.f32 %v3960_v43, %v1921_v28  ;;  %v3050_v36 = vpop.f32.mrb[63].mxu1 }
 0x95e   :  { %3112 = vtanh.f32 %v1933_v35 }
 0x968   :  { %v3113_v4 = vpop.eup %3112 }
 0x969   :  { %v1935_v23 = vpack.c.bf16 %v3113_v4, %v3113_v4 }
 0x96b   :  { %1936 = vst [vmem:[#allocation2 + $0x4] sm:$0xf] %v1935_v23 }
 0x96c   :  { %3260 = dma.done.wait [#allocation9 + $0x4], 1024 }
 0x96d   :  { %3261 = vsyncadd [#allocation9 + $0x4], 4294966272 }
 0x96e   :  { %3262 = dma.done.wait [#allocation9 + $0x5], 16 }
 0x96f   :  { %3263 = vsyncadd [#allocation9 + $0x5], 4294967280  ;;  %3051 = vmatprep.subr.bf16.mxu0 %v3273_v2  ;;  %3067 = vmatprep.mubr.msk.bf16.mxu0 %vm3275_vm0, %v3273_v2  ;;  %v1950_v6 = vld [vmem:[#allocation7] sm:$0xff]  ;;  %v1951_v38 = vld [vmem:[#allocation7 + $0x8] sm:$0xff]  ;;  %s3276_s5 = smov [#allocation13]  }
 0x970   :  { %3052 = vmatpush3.bf16.msra.mxu0 %v1950_v6  ;;  %v1952_v43 = vld [vmem:[#allocation7 + $0x10] sm:$0xff]  ;;  %v1953_v53 = vld [vmem:[#allocation7 + $0x18] sm:$0xff]  ;;  %v1954_v40 = vld [vmem:[#allocation7 + $0x20] sm:$0xff]  ;;  %s2021_s13 = sshll.u32 %s3276_s5, 4  ;;  %s2022_s13 = int_to_ptr.vmem [resolvable:$true] %s2021_s13 }
 0x971   :  { %3053 = vmatprep.subr.bf16.mxu0 %v3273_v2  ;;  %v1955_v42 = vld [vmem:[#allocation7 + $0x28] sm:$0xff]  ;;  %v1956_v44 = vld [vmem:[#allocation7 + $0x30] sm:$0xff]  ;;  %v1957_v45 = vld [vmem:[#allocation7 + $0x38] sm:$0xff]  ;;  %s3228_s14 = scalar_lea.vmem %s2022_s13, 128  ;;  %p3233_p13 = scmp.lt.s32.totalorder %s2022_s13, %s2022_s13 }
 0x972   :  { %v1949_v46 = vld [vmem:[#allocation2 + $0x4] sm:$0xf]  ;;  %v2107_v47 = vld [vmem:[#allocation8] ss:$0 sm:$0xff]  ;;  %p3229_p12 = scmp.ne.s32.totalorder %s2022_s13, %s3228_s14  ;;  %p3234_p0 = scmp.lt.s32.totalorder %s3228_s14, %s3228_s14 }
 0x974   :  { %3054 = vmatpush3.bf16.msra.mxu0 %v1951_v38  ;;  %p3235_p1 = por %p3234_p0, %p3233_p13 }
 0x975   :  { %3055 = vmatprep.subr.bf16.mxu0 %v3273_v2 }
 0x976   :  { %p3236_p2 = pnand %p3235_p1, %p3229_p12 }
 0x978   :  { %3056 = vmatpush3.bf16.msra.mxu0 %v1952_v43 }
 0x979   :  { %3057 = vmatprep.subr.bf16.mxu0 %v3273_v2 }
 0x97c   :  { %3058 = vmatpush3.bf16.msra.mxu0 %v1953_v53 }
 0x97d   :  { %3059 = vmatprep.subr.bf16.mxu0 %v3273_v2 }
 0x980   :  { %3060 = vmatpush3.bf16.msra.mxu0 %v1954_v40 }
 0x981   :  { %3061 = vmatprep.subr.bf16.mxu0 %v3273_v2 }
 0x984   :  { %3062 = vmatpush3.bf16.msra.mxu0 %v1955_v42 }
 0x985   :  { %3063 = vmatprep.subr.bf16.mxu0 %v3273_v2 }
 0x988   :  { %3064 = vmatpush3.bf16.msra.mxu0 %v1956_v44 }
 0x989   :  { %3065 = vmatprep.subr.bf16.mxu0 %v3273_v2 }
 0x98c   :  { %3066 = vmatpush3.bf16.msra.mxu0 %v1957_v45 }
 0x98f   :  { %3068 = vmatmul.mubr.bf16.vlgmr.msra.gmra.mrb[64].mxu0 %v1949_v46 }
 0xa62   :  { %v1999_v48 = vpop.f32.mrb[64].mxu0 }
 0xa63   :  { %v2000_v5 = vadd.f32 %v2107_v47, %v1999_v48  ;;  %v3069_v7 = vpop.f32.mrb[65].mxu0 }
 0xa64   :  { %v2002_v9 = vpop.f32.mrb[66].mxu0 }
 0xa65   :  { %2005 = vmax.xlane.f32.xlu0 %v2000_v5  ;;  %v3070_v11 = vpop.f32.mrb[67].mxu0 }
 0xaf2   :  { %v2006_v13 = vpop.xlane.xlu0 %2005 }
 0xaf3   :  { %v2007_v15 = vsub.f32 %v2000_v5, %v2006_v13 }
 0xaf5   :  { %v2008_v16 = vmul.f32 1.442695, %v2007_v15 }
 0xaf7   :  { %3114 = vpow2.f32 %v2008_v16 }
 0xb01   :  { %v3115_v17 = vpop.eup %3114 }
 0xb02   :  { %2010 = vadd.xlane.f32.xlu0 %v3115_v17 }
 0xb8f   :  { %v2011_v19 = vpop.xlane.xlu0 %2010 }
 0xb90   :  { %3116 = vrcp.f32 %v2011_v19 }
 0xb9a   :  { %v3117_v2 = vpop.eup %3116 }
 0xb9b   :  { %v2013_v22 = vmul.f32 %v3117_v2, %v3115_v17 }
 0xb9d   :  { %2014 = vst [vmem:[#allocation13] sm:$0xff] %v2013_v22 }
 0xb9e   :  { %3239 = shalt.err (!%p3236_p2)
}
 0xb9f   :  { %s3240_s17 = scalar_lea.hbm %s4140_s7, 128 }
 0xba0   :  { %p3241_p3 = scmp.ne.s32.totalorder %s4140_s7, %s3240_s17  ;;  %p3244_p4 = scmp.lt.u32.totalorder %s3240_s17, %s4140_s7 }
 0xba2   :  { %p3246_p5 = pnand %p3244_p4, %p3241_p3 }
 0xba4   :  { %3249 = shalt.err (!%p3246_p5)
}
 0xba5   :  { %2024 = dma.vmem_to_hbm [thread:$0]  %s2022_s13, 128, %s4140_s7, [#allocation12]  }
 0xba6   :  { %3264 = dma.done.wait [#allocation12], 128  }
 0xba7   :  { %3265 = vsyncadd [#allocation12], 4294967168 }
 0xba8   :  { %2028 = vsyncpa [#allocation11], 1 }
 0xba9   :  { %2029 = vsyncpa [#allocation12], 1 }
 0xbaa   :  { %2030 = vsyncmov [#allocation9] }
 0xbad   :  { %s2031_s3 = vpop.sfrf %2030 }
 0xbae   :  { %p2108_p6 = scmp.ne.s32.totalorder %s2031_s3, 0 }
 0xbb0   :  { %2035 = shalt.err (%p2108_p6)  }
 0xbb1   :  { %2037 = vsyncmov [#allocation9 + $0x1] }
 0xbb4   :  { %s2038_s18 = vpop.sfrf %2037 }
 0xbb5   :  { %p2109_p7 = scmp.ne.s32.totalorder %s2038_s18, 0 }
 0xbb7   :  { %2042 = shalt.err (%p2109_p7)  }
 0xbb8   :  { %2044 = vsyncmov [#allocation9 + $0x2] }
 0xbbb   :  { %s2045_s26 = vpop.sfrf %2044 }
 0xbbc   :  { %p2110_p8 = scmp.ne.s32.totalorder %s2045_s26, 0 }
 0xbbe   :  { %2049 = shalt.err (%p2110_p8)  }
 0xbbf   :  { %2051 = vsyncmov [#allocation9 + $0x3] }
 0xbc2   :  { %s2052_s4 = vpop.sfrf %2051 }
 0xbc3   :  { %p2111_p9 = scmp.ne.s32.totalorder %s2052_s4, 0 }
 0xbc5   :  { %2056 = shalt.err (%p2111_p9)  }
 0xbc6   :  { %2058 = vsyncmov [#allocation9 + $0x4] }
 0xbc9   :  { %s2059_s7 = vpop.sfrf %2058 }
 0xbca   :  { %p2112_p10 = scmp.ne.s32.totalorder %s2059_s7, 0 }
 0xbcc   :  { %2063 = shalt.err (%p2112_p10)  }
 0xbcd   :  { %2065 = vsyncmov [#allocation9 + $0x5] }
 0xbd0   :  { %s2066_s0 = vpop.sfrf %2065 }
 0xbd1   :  { %p2113_p11 = scmp.ne.s32.totalorder %s2066_s0, 0 }
 0xbd3   :  { %2070 = shalt.err (%p2113_p11)  }

</bundles_post_ra>
